<compile_context>
chip_gen: v5e
topology: v5e:2x2
jax: 0.10.0
libtpu: 0.0.40
codegen_flags: <defaults>
</compile_context>

<pallas_src>
import functools

import jax
import jax.numpy as jnp
from jax import lax
from jax.experimental import pallas as pl
from jax.experimental.pallas import tpu as pltpu

EPS = 1e-5
_MIB = 1024 * 1024
_SPLIT = 2  # leading "parallel" stats-grid axis (feeds both TensorCores on v7x)


def _round_up(x, m):
    return (x + m - 1) // m * m


# --------------------------------------------------------------------------- #
# Per-generation config + feature probes
# --------------------------------------------------------------------------- #
@functools.lru_cache(maxsize=None)
def _tpu_config():
    """tile_m / vmem_limit selected per TPU generation (conservative fallback)."""
    try:
        vmem = int(pltpu.get_tpu_info().vmem_capacity_bytes)
    except Exception:
        vmem = 0
    if vmem >= 100 * _MIB:                       # v5e / v6e: 128 MiB physical VMEM
        return {"tile_m": 512, "vmem_limit": 96 * _MIB}
    return {"tile_m": 256, "vmem_limit": 56 * _MIB}   # v7x (64 MiB / TC) or unknown


@functools.lru_cache(maxsize=None)
def _single_buffer_supported():
    """Probe once whether pipeline_mode=pl.Buffered(1) is accepted on this install."""
    try:
        spec = pl.BlockSpec((8, 128), lambda i: (0, 0), pipeline_mode=pl.Buffered(1))

        def k(x_ref, o_ref):
            o_ref[...] = x_ref[...] + 1.0

        f = pl.pallas_call(
            k,
            grid=(1,),
            in_specs=[spec],
            out_specs=pl.BlockSpec((8, 128), lambda i: (0, 0)),
            out_shape=jax.ShapeDtypeStruct((8, 128), jnp.float32),
        )
        jax.block_until_ready(f(jnp.zeros((8, 128), jnp.float32)))
        return True
    except Exception:
        return False


def _cost(flops, bytes_accessed):
    try:
        return pl.CostEstimate(flops=int(flops), transcendentals=0,
                               bytes_accessed=int(bytes_accessed))
    except Exception:
        return None


# --------------------------------------------------------------------------- #
# Kernels
# --------------------------------------------------------------------------- #
def _make_stats1_kernel(tile_m, steps, m_true, need_mask):
    """Per-core column sum / sum-of-squares of h1 = relu(x @ W1 + b1)."""

    def kernel(x_ref, w1_ref, b1_ref, sum_ref, ssq_ref):
        c = pl.program_id(0)
        i = pl.program_id(1)

        @pl.when(i == 0)
        def _init():
            sum_ref[...] = jnp.zeros_like(sum_ref)
            ssq_ref[...] = jnp.zeros_like(ssq_ref)

        h1 = jnp.dot(x_ref[...], w1_ref[...], preferred_element_type=jnp.float32)
        h1 = jnp.maximum(h1 + b1_ref[...], 0.0)

        def _acc(h):
            sum_ref[...] += jnp.sum(h, axis=0, keepdims=True)
            ssq_ref[...] += jnp.sum(h * h, axis=0, keepdims=True)

        if need_mask:
            tile_start = (c * steps + i) * tile_m
            has_pad = tile_start + tile_m > m_true

            @pl.when(has_pad)              # only tiles that actually hold pad rows
            def _():
                rows = tile_start + lax.broadcasted_iota(jnp.int32, (tile_m, 1), 0)
                _acc(jnp.where(rows < m_true, h1, 0.0))

            @pl.when(jnp.logical_not(has_pad))
            def _():
                _acc(h1)
        else:
            _acc(h1)

    return kernel


def _make_stats2_kernel(tile_m, steps, m_true, need_mask):
    """Per-core column sum / sum-of-squares of h2 = bn1(h1) @ W2 = h1 @ W2' + c1."""

    def kernel(x_ref, w1_ref, b1_ref, w2_ref, c1_ref, sum_ref, ssq_ref):
        c = pl.program_id(0)
        i = pl.program_id(1)

        @pl.when(i == 0)
        def _init():
            sum_ref[...] = jnp.zeros_like(sum_ref)
            ssq_ref[...] = jnp.zeros_like(ssq_ref)

        h1 = jnp.dot(x_ref[...], w1_ref[...], preferred_element_type=jnp.float32)
        h1 = jnp.maximum(h1 + b1_ref[...], 0.0)
        h2 = jnp.dot(h1.astype(jnp.bfloat16), w2_ref[...],
                     preferred_element_type=jnp.float32) + c1_ref[...]

        def _acc(h):
            sum_ref[...] += jnp.sum(h, axis=0, keepdims=True)
            ssq_ref[...] += jnp.sum(h * h, axis=0, keepdims=True)

        if need_mask:
            tile_start = (c * steps + i) * tile_m
            has_pad = tile_start + tile_m > m_true

            @pl.when(has_pad)
            def _():
                rows = tile_start + lax.broadcasted_iota(jnp.int32, (tile_m, 1), 0)
                _acc(jnp.where(rows < m_true, h2, 0.0))

            @pl.when(jnp.logical_not(has_pad))
            def _():
                _acc(h2)
        else:
            _acc(h2)

    return kernel


def _out_kernel(x_ref, w1_ref, b1_ref, w2_ref, c1_ref, w3_ref, c3_ref, o_ref):
    """out = bn2(bn1(relu(x@W1+b1)) @ W2) @ W3 + b3, BN folded into W2'/c1 and W3'/c3."""
    h1 = jnp.dot(x_ref[...], w1_ref[...], preferred_element_type=jnp.float32)
    h1 = jnp.maximum(h1 + b1_ref[...], 0.0)
    h2 = jnp.dot(h1.astype(jnp.bfloat16), w2_ref[...],
                 preferred_element_type=jnp.float32) + c1_ref[...]
    out = jnp.dot(h2.astype(jnp.bfloat16), w3_ref[...],
                  preferred_element_type=jnp.float32) + c3_ref[...]
    o_ref[...] = out.astype(o_ref.dtype)


# --------------------------------------------------------------------------- #
# Forward wrapper
# --------------------------------------------------------------------------- #
@functools.partial(
    jax.jit,
    static_argnames=("tile_m", "vmem_limit_bytes", "out_dtype", "single_buffer"))
def _forward_impl(x, params, *, tile_m, vmem_limit_bytes, out_dtype, single_buffer):
    B, T, D1 = x.shape
    w1, b1, w2, w3, b3 = (params["w1"], params["b1"], params["w2"],
                          params["w3"], params["b3"])
    D2, D3, OUT = w1.shape[0], w2.shape[0], w3.shape[0]
    assert w3.shape[1] == D1 and D3 == D1, \
        "module requires linear3_in_dim == linear1_in_dim"
    out_dt = jnp.dtype(out_dtype)

    M = B * T
    tm = max(16, min(tile_m, _round_up(M, 16)))      # 16-aligned (bf16 sublane packing)
    Mp = _round_up(M, _SPLIT * tm)                   # stats passes: rows split per core
    steps = Mp // (_SPLIT * tm)
    need_mask = Mp != M
    Mp3 = _round_up(M, tm)                           # pass 3 visits only real-row tiles
    n3 = Mp3 // tm

    D1p, D2p, D3p = (_round_up(d, 128) for d in (D1, D2, D3))

    # ---- wrapper-side layout plumbing: cast to bf16 first, pad only if needed ----
    x_bf = x.reshape(M, D1).astype(jnp.bfloat16)
    if Mp != M or D1p != D1:
        x_bf = jnp.pad(x_bf, ((0, Mp - M), (0, D1p - D1)))

    def _pad2(a, r, c):
        return a if (r == 0 and c == 0) else jnp.pad(a, ((0, r), (0, c)))

    w1t = _pad2(w1.T.astype(jnp.float32), D1p - D1, D2p - D2)    # (D1p, D2p)
    w2t = _pad2(w2.T.astype(jnp.float32), D2p - D2, D3p - D3)    # (D2p, D3p)
    w3t = _pad2(w3.T.astype(jnp.float32), D3p - D3, 0)           # (D3p, OUT)  true OUT
    b1r = jnp.pad(b1.astype(jnp.float32), (0, D2p - D2)).reshape(1, D2p)
    b3r = b3.astype(jnp.float32).reshape(1, OUT)
    w1_bf = w1t.astype(jnp.bfloat16)

    # ---- BlockSpecs ----
    def _const_spec(shape, two_axes):
        idx = (lambda c, i: (0,) * len(shape)) if two_axes else (lambda i: (0,) * len(shape))
        if single_buffer:
            return pl.BlockSpec(shape, idx, pipeline_mode=pl.Buffered(1))
        return pl.BlockSpec(shape, idx)

    x_stats_spec = pl.BlockSpec((tm, D1p), lambda c, i: (c * steps + i, 0))
    x_out_spec = pl.BlockSpec((tm, D1p), lambda i: (i, 0))

    def _acc_spec(d):
        # (8, d) block keeps the sublane dim aligned; row 0 carries the per-core
        # partial (all 8 rows receive the same broadcasted update).
        return pl.BlockSpec((8, d), lambda c, i: (c, 0))

    stats_cp = pltpu.CompilerParams(
        dimension_semantics=("parallel", "arbitrary"),
        vmem_limit_bytes=vmem_limit_bytes)
    out_cp = pltpu.CompilerParams(
        dimension_semantics=("parallel",),
        vmem_limit_bytes=vmem_limit_bytes)

    x_bytes = Mp * D1p * 2
    w1_bytes, w2_bytes, w3_bytes = D1p * D2p * 2, D2p * D3p * 2, D3p * OUT * 2

    # ---- pass 1: column sum / sumsq of h1 -------------------------------------
    sum1, ssq1 = pl.pallas_call(
        _make_stats1_kernel(tm, steps, M, need_mask),
        grid=(_SPLIT, steps),
        in_specs=[x_stats_spec,
                  _const_spec((D1p, D2p), True),
                  _const_spec((1, D2p), True)],
        out_specs=(_acc_spec(D2p), _acc_spec(D2p)),
        out_shape=(jax.ShapeDtypeStruct((_SPLIT * 8, D2p), jnp.float32),
                   jax.ShapeDtypeStruct((_SPLIT * 8, D2p), jnp.float32)),
        compiler_params=stats_cp,
        cost_estimate=_cost(2 * Mp * D1p * D2p,
                            x_bytes + w1_bytes + 4 * D2p + 2 * _SPLIT * 8 * D2p * 4),
    )(x_bf, w1_bf, b1r)

    def _combine(raw, d):   # (SPLIT*8, d) -> (1, d): row 0 of each per-core block
        return raw.reshape(_SPLIT, 8, d)[:, 0, :].sum(axis=0, keepdims=True)

    inv_m = 1.0 / M
    m1 = _combine(sum1, D2p) * inv_m
    v1 = jnp.maximum(_combine(ssq1, D2p) * inv_m - m1 * m1, 0.0)   # biased variance
    s1 = lax.rsqrt(v1 + EPS)                                       # (1, D2p)
    w2f = s1.reshape(D2p, 1) * w2t                                 # fold bn1 into linear2
    c1 = -(m1 * s1) @ w2t                                          # (1, D3p)
    w2_bf = w2f.astype(jnp.bfloat16)

    # ---- pass 2: column sum / sumsq of h2 = h1 @ W2' + c1 ----------------------
    sum2, ssq2 = pl.pallas_call(
        _make_stats2_kernel(tm, steps, M, need_mask),
        grid=(_SPLIT, steps),
        in_specs=[x_stats_spec,
                  _const_spec((D1p, D2p), True), _const_spec((1, D2p), True),
                  _const_spec((D2p, D3p), True), _const_spec((1, D3p), True)],
        out_specs=(_acc_spec(D3p), _acc_spec(D3p)),
        out_shape=(jax.ShapeDtypeStruct((_SPLIT * 8, D3p), jnp.float32),
                   jax.ShapeDtypeStruct((_SPLIT * 8, D3p), jnp.float32)),
        compiler_params=stats_cp,
        cost_estimate=_cost(2 * Mp * (D1p * D2p + D2p * D3p),
                            x_bytes + w1_bytes + w2_bytes + 2 * _SPLIT * 8 * D3p * 4),
    )(x_bf, w1_bf, b1r, w2_bf, c1)

    m2 = _combine(sum2, D3p) * inv_m
    v2 = jnp.maximum(_combine(ssq2, D3p) * inv_m - m2 * m2, 0.0)
    s2 = lax.rsqrt(v2 + EPS)                                       # (1, D3p)
    w3f = s2.reshape(D3p, 1) * w3t                                 # fold bn2 into linear3
    c3 = b3r - (m2 * s2) @ w3t                                     # (1, OUT) incl. b3
    w3_bf = w3f.astype(jnp.bfloat16)

    # ---- pass 3: emit output, unpadded OUT columns, M axis parallel ------------
    outp = pl.pallas_call(
        _out_kernel,
        grid=(n3,),
        in_specs=[x_out_spec,
                  _const_spec((D1p, D2p), False), _const_spec((1, D2p), False),
                  _const_spec((D2p, D3p), False), _const_spec((1, D3p), False),
                  _const_spec((D3p, OUT), False), _const_spec((1, OUT), False)],
        out_specs=pl.BlockSpec((tm, OUT), lambda i: (i, 0)),
        out_shape=jax.ShapeDtypeStruct((Mp3, OUT), out_dt),
        compiler_params=out_cp,
        cost_estimate=_cost(
            2 * Mp3 * (D1p * D2p + D2p * D3p + D3p * OUT),
            Mp3 * D1p * 2 + w1_bytes + w2_bytes + w3_bytes + Mp3 * OUT * out_dt.itemsize),
    )(x_bf, w1_bf, b1r, w2_bf, c1, w3_bf, c3)

    if Mp3 != M:
        # TODO(synk): this row slice costs one extra copy of the output when
        # M % tile_m != 0; consumers that can read the padded (Mp3, OUT) buffer
        # directly should do so (padded rows hold deterministic junk).
        outp = outp[:M]
    return outp.reshape(B, T, OUT)


def output_layer_forward(x, params, *, tile_m=None, vmem_limit_bytes=None,
                         out_dtype=jnp.float32):
    """x: (B, T, D1). Returns (B, T, out_dim) in out_dtype (default float32)."""
    cfg = _tpu_config()
    if tile_m is None:
        tile_m = cfg["tile_m"]
    if vmem_limit_bytes is None:
        vmem_limit_bytes = cfg["vmem_limit"]
    return _forward_impl(
        x, params,
        tile_m=int(tile_m),
        vmem_limit_bytes=int(vmem_limit_bytes),
        out_dtype=jnp.dtype(out_dtype),
        single_buffer=_single_buffer_supported())


# --------------------------------------------------------------------------- #
# Pure-JAX reference (f32) mirroring the PyTorch forward (training-mode BN)
# --------------------------------------------------------------------------- #
def reference_forward(x, params):
    w1, b1, w2, w3, b3 = (params["w1"], params["b1"], params["w2"],
                          params["w3"], params["b3"])
    B, T, D1 = x.shape
    h = x.reshape(B * T, D1)
    h = jnp.maximum(h @ w1.T + b1, 0.0)
    h = (h - h.mean(0)) / jnp.sqrt(h.var(0) + EPS)
    h = h @ w2.T
    h = (h - h.mean(0)) / jnp.sqrt(h.var(0) + EPS)
    h = h @ w3.T + b3
    return h.reshape(B, T, -1)


def init_params(key, d1, d2, d3, out_dim):
    ks = jax.random.split(key, 5)

    def u(k, shape, fan_in):
        bound = 1.0 / jnp.sqrt(fan_in)
        return jax.random.uniform(k, shape, jnp.float32, -bound, bound)

    return {
        "w1": u(ks[0], (d2, d1), d1),
        "b1": u(ks[1], (d2,), d1),
        "w2": u(ks[2], (d3, d2), d2),
        "w3": u(ks[3], (out_dim, d1), d1),   # nn.Linear(linear1_in_dim, out_dim)
        "b3": u(ks[4], (out_dim,), d1),
    }


if __name__ == "__main__":
    # Small shapes consistent with OutputLayer (linear3_in_dim == linear1_in_dim).
    # M = 300 with tile_m = 128 exercises the multi-tile grid, the 2-way stats split,
    # row-pad masking and the non-128-multiple OUT (masked final vst) path.
    B, T = 3, 100
    D1, D2, D3, OUT = 32, 48, 32, 20

    key = jax.random.PRNGKey(0)
    kx, kp = jax.random.split(key)
    x = jax.random.normal(kx, (B, T, D1), jnp.float32)
    params = init_params(kp, D1, D2, D3, OUT)

    out = output_layer_forward(x, params, tile_m=128)
    out = jax.block_until_ready(out)

    ref = reference_forward(x, params)
    assert out.shape == (B, T, OUT)
    diff = out.astype(jnp.float32) - ref
    max_abs = float(jnp.max(jnp.abs(diff)))
    rel_l2 = float(jnp.sqrt(jnp.sum(diff * diff)) / jnp.sqrt(jnp.sum(ref * ref)))
    # bf16 MXU inputs with f32 accumulation: expect ~1e-3-level deviation.
    assert max_abs < 1e-1 and rel_l2 < 3e-2, (max_abs, rel_l2)

    print("KERNEL_OK")
</pallas_src>

<mosaic_0001>
module attributes {stable_mosaic.version = 11 : i64} {
  func.func @k(%arg0: i32, %arg1: memref<8x128xf32, #tpu.memory_space<vmem>>, %arg2: memref<8x128xf32, #tpu.memory_space<vmem>>) attributes {dimension_semantics = [#tpu.dimension_semantics<arbitrary>], iteration_bounds = array<i64: 1>, scalar_prefetch = 0 : i64, scratch_operands = 0 : i64, tpu.core_type = #tpu.core_type<tc>, window_params = [{pipeline_mode = #tpu.pipeline_mode<synchronous>, transform_indices = @transform_0, window_bounds = array<i64: 8, 128>}, {pipeline_mode = #tpu.pipeline_mode<synchronous>, transform_indices = @transform_1, window_bounds = array<i64: 8, 128>}]} {
    %c0 = arith.constant 0 : index
    %c0_0 = arith.constant 0 : index
    %0 = vector.load %arg1[%c0, %c0_0] : memref<8x128xf32, #tpu.memory_space<vmem>>, vector<8x128xf32>
    %cst = arith.constant 1.000000e+00 : f32
    %1 = vector.broadcast %cst : f32 to vector<8x128xf32>
    %2 = arith.addf %0, %1 : vector<8x128xf32>
    %c0_1 = arith.constant 0 : index
    %c0_2 = arith.constant 0 : index
    %3 = vector.load %arg2[%c0_1, %c0_2] : memref<8x128xf32, #tpu.memory_space<vmem>>, vector<8x128xf32>
    tpu.vector_store %arg2[%c0_1, %c0_2], %2 {strides = array<i32>} : memref<8x128xf32, #tpu.memory_space<vmem>>, vector<8x128xf32>,
    return
  }
  func.func @transform_0(%arg0: i32) -> (i32, i32) {
    %c0_i32 = arith.constant 0 : i32
    %c0_i32_0 = arith.constant 0 : i32
    %c0_i32_1 = arith.constant 0 : i32
    return %c0_i32, %c0_i32_0 : i32, i32
  }
  func.func @transform_1(%arg0: i32) -> (i32, i32) {
    %c0_i32 = arith.constant 0 : i32
    %c0_i32_0 = arith.constant 0 : i32
    %c0_i32_1 = arith.constant 0 : i32
    return %c0_i32, %c0_i32_0 : i32, i32
  }
}

module attributes {stable_mosaic.version = 11 : i64} {
  func.func @kernel(%arg0: i32, %arg1: i32, %arg2: memref<128x128xbf16, #tpu.memory_space<vmem>>, %arg3: memref<128x128xbf16, #tpu.memory_space<vmem>>, %arg4: memref<1x128xf32, #tpu.memory_space<vmem>>, %arg5: memref<128x128xbf16, #tpu.memory_space<vmem>>, %arg6: memref<1x128xf32, #tpu.memory_space<vmem>>, %arg7: memref<8x128xf32, #tpu.memory_space<vmem>>, %arg8: memref<8x128xf32, #tpu.memory_space<vmem>>) attributes {dimension_semantics = [#tpu.dimension_semantics<parallel>, #tpu.dimension_semantics<arbitrary>], iteration_bounds = array<i64: 2, 2>, scalar_prefetch = 0 : i64, scratch_operands = 0 : i64, tpu.core_type = #tpu.core_type<tc>, window_params = [{transform_indices = @transform_0, window_bounds = array<i64: 128, 128>}, {pipeline_mode = #tpu.pipeline_mode<synchronous>, transform_indices = @transform_1, window_bounds = array<i64: 128, 128>}, {pipeline_mode = #tpu.pipeline_mode<synchronous>, transform_indices = @transform_2, window_bounds = array<i64: 1, 128>}, {pipeline_mode = #tpu.pipeline_mode<synchronous>, transform_indices = @transform_3, window_bounds = array<i64: 128, 128>}, {pipeline_mode = #tpu.pipeline_mode<synchronous>, transform_indices = @transform_4, window_bounds = array<i64: 1, 128>}, {transform_indices = @transform_5, window_bounds = array<i64: 8, 128>}, {transform_indices = @transform_6, window_bounds = array<i64: 8, 128>}]} {
    %c0_i32 = arith.constant 0 : i32
    %0 = arith.cmpi eq, %arg1, %c0_i32 : i32
    %1 = arith.extui %0 : i1 to i32
    %c0_i32_0 = arith.constant 0 : i32
    %2 = arith.cmpi ne, %1, %c0_i32_0 : i32
    scf.if %2 {
      %cst_15 = arith.constant 0.000000e+00 : f32
      %27 = vector.broadcast %cst_15 : f32 to vector<8x128xf32>
      %c0_16 = arith.constant 0 : index
      %c0_17 = arith.constant 0 : index
      %28 = vector.load %arg7[%c0_16, %c0_17] : memref<8x128xf32, #tpu.memory_space<vmem>>, vector<8x128xf32>
      tpu.vector_store %arg7[%c0_16, %c0_17], %27 {strides = array<i32>} : memref<8x128xf32, #tpu.memory_space<vmem>>, vector<8x128xf32>,
      %cst_18 = arith.constant 0.000000e+00 : f32
      %29 = vector.broadcast %cst_18 : f32 to vector<8x128xf32>
      %c0_19 = arith.constant 0 : index
      %c0_20 = arith.constant 0 : index
      %30 = vector.load %arg8[%c0_19, %c0_20] : memref<8x128xf32, #tpu.memory_space<vmem>>, vector<8x128xf32>
      tpu.vector_store %arg8[%c0_19, %c0_20], %29 {strides = array<i32>} : memref<8x128xf32, #tpu.memory_space<vmem>>, vector<8x128xf32>,
    } else {
    }
    %c0 = arith.constant 0 : index
    %c0_1 = arith.constant 0 : index
    %3 = vector.load %arg2[%c0, %c0_1] : memref<128x128xbf16, #tpu.memory_space<vmem>>, vector<128x128xbf16>
    %c0_2 = arith.constant 0 : index
    %c0_3 = arith.constant 0 : index
    %4 = vector.load %arg3[%c0_2, %c0_3] : memref<128x128xbf16, #tpu.memory_space<vmem>>, vector<128x128xbf16>
    %cst = arith.constant dense<0.000000e+00> : vector<128x128xf32>
    %5 = tpu.matmul %3, %4, %cst {dimension_numbers = #tpu.dot_dimension_numbers<[1], [0], [0], [1], [0, 0, 1, 1], [], []>} : vector<128x128xbf16>, vector<128x128xbf16>, vector<128x128xf32> -> vector<128x128xf32>
    %c0_4 = arith.constant 0 : index
    %c0_5 = arith.constant 0 : index
    %6 = vector.load %arg4[%c0_4, %c0_5] : memref<1x128xf32, #tpu.memory_space<vmem>>, vector<1x128xf32>
    %7 = vector.broadcast %6 : vector<1x128xf32> to vector<128x128xf32>
    %8 = arith.addf %5, %7 : vector<128x128xf32>
    %cst_6 = arith.constant 0.000000e+00 : f32
    %9 = vector.broadcast %cst_6 : f32 to vector<128x128xf32>
    %10 = arith.maximumf %8, %9 : vector<128x128xf32>
    %11 = arith.truncf %10 : vector<128x128xf32> to vector<128x128xbf16>
    %c0_7 = arith.constant 0 : index
    %c0_8 = arith.constant 0 : index
    %12 = vector.load %arg5[%c0_7, %c0_8] : memref<128x128xbf16, #tpu.memory_space<vmem>>, vector<128x128xbf16>
    %cst_9 = arith.constant dense<0.000000e+00> : vector<128x128xf32>
    %13 = tpu.matmul %11, %12, %cst_9 {dimension_numbers = #tpu.dot_dimension_numbers<[1], [0], [0], [1], [0, 0, 1, 1], [], []>} : vector<128x128xbf16>, vector<128x128xbf16>, vector<128x128xf32> -> vector<128x128xf32>
    %c0_10 = arith.constant 0 : index
    %c0_11 = arith.constant 0 : index
    %14 = vector.load %arg6[%c0_10, %c0_11] : memref<1x128xf32, #tpu.memory_space<vmem>>, vector<1x128xf32>
    %15 = vector.broadcast %14 : vector<1x128xf32> to vector<128x128xf32>
    %16 = arith.addf %13, %15 : vector<128x128xf32>
    %c2_i32 = arith.constant 2 : i32
    %17 = arith.muli %arg0, %c2_i32 : i32
    %18 = arith.addi %17, %arg1 : i32
    %c128_i32 = arith.constant 128 : i32
    %19 = arith.muli %18, %c128_i32 : i32
    %c128_i32_12 = arith.constant 128 : i32
    %20 = arith.addi %19, %c128_i32_12 : i32
    %c300_i32 = arith.constant 300 : i32
    %21 = arith.cmpi sgt, %20, %c300_i32 : i32
    %22 = arith.extui %21 : i1 to i32
    %c0_i32_13 = arith.constant 0 : i32
    %23 = arith.cmpi ne, %22, %c0_i32_13 : i32
    scf.if %23 {
      %27 = tpu.iota {dimensions = array<i32: 0>} : vector<128x1xi32>
      %28 = vector.broadcast %19 : i32 to vector<128x1xi32>
      %29 = arith.addi %28, %27 : vector<128x1xi32>
      %c300_i32_15 = arith.constant 300 : i32
      %30 = vector.broadcast %c300_i32_15 : i32 to vector<128x1xi32>
      %31 = arith.cmpi slt, %29, %30 : vector<128x1xi32>
      %cst_16 = arith.constant 0.000000e+00 : f32
      %32 = vector.shape_cast %31 : vector<128x1xi1> to vector<128x1xi1>
      %33 = vector.broadcast %32 : vector<128x1xi1> to vector<128x128xi1>
      %34 = vector.broadcast %cst_16 : f32 to vector<128x128xf32>
      %35 = arith.select %33, %16, %34 : vector<128x128xi1>, vector<128x128xf32>
      %c0_17 = arith.constant 0 : index
      %c0_18 = arith.constant 0 : index
      %36 = vector.load %arg7[%c0_17, %c0_18] : memref<8x128xf32, #tpu.memory_space<vmem>>, vector<8x128xf32>
      %cst_19 = arith.constant dense<0.000000e+00> : vector<128xf32>
      %37 = vector.multi_reduction <add>, %35, %cst_19 [0] : vector<128x128xf32> to vector<128xf32>
      %38 = vector.shape_cast %37 : vector<128xf32> to vector<1x128xf32>
      %39 = vector.broadcast %38 : vector<1x128xf32> to vector<8x128xf32>
      %40 = arith.addf %36, %39 : vector<8x128xf32>
      %c0_20 = arith.constant 0 : index
      %c0_21 = arith.constant 0 : index
      %41 = vector.load %arg7[%c0_20, %c0_21] : memref<8x128xf32, #tpu.memory_space<vmem>>, vector<8x128xf32>
      tpu.vector_store %arg7[%c0_20, %c0_21], %40 {strides = array<i32>} : memref<8x128xf32, #tpu.memory_space<vmem>>, vector<8x128xf32>,
      %c0_22 = arith.constant 0 : index
      %c0_23 = arith.constant 0 : index
      %42 = vector.load %arg8[%c0_22, %c0_23] : memref<8x128xf32, #tpu.memory_space<vmem>>, vector<8x128xf32>
      %43 = arith.mulf %35, %35 : vector<128x128xf32>
      %cst_24 = arith.constant dense<0.000000e+00> : vector<128xf32>
      %44 = vector.multi_reduction <add>, %43, %cst_24 [0] : vector<128x128xf32> to vector<128xf32>
      %45 = vector.shape_cast %44 : vector<128xf32> to vector<1x128xf32>
      %46 = vector.broadcast %45 : vector<1x128xf32> to vector<8x128xf32>
      %47 = arith.addf %42, %46 : vector<8x128xf32>
      %c0_25 = arith.constant 0 : index
      %c0_26 = arith.constant 0 : index
      %48 = vector.load %arg8[%c0_25, %c0_26] : memref<8x128xf32, #tpu.memory_space<vmem>>, vector<8x128xf32>
      tpu.vector_store %arg8[%c0_25, %c0_26], %47 {strides = array<i32>} : memref<8x128xf32, #tpu.memory_space<vmem>>, vector<8x128xf32>,
    } else {
    }
    %true = arith.constant true
    %24 = arith.xori %21, %true : i1
    %25 = arith.extui %24 : i1 to i32
    %c0_i32_14 = arith.constant 0 : i32
    %26 = arith.cmpi ne, %25, %c0_i32_14 : i32
    scf.if %26 {
      %c0_15 = arith.constant 0 : index
      %c0_16 = arith.constant 0 : index
      %27 = vector.load %arg7[%c0_15, %c0_16] : memref<8x128xf32, #tpu.memory_space<vmem>>, vector<8x128xf32>
      %cst_17 = arith.constant dense<0.000000e+00> : vector<128xf32>
      %28 = vector.multi_reduction <add>, %16, %cst_17 [0] : vector<128x128xf32> to vector<128xf32>
      %29 = vector.shape_cast %28 : vector<128xf32> to vector<1x128xf32>
      %30 = vector.broadcast %29 : vector<1x128xf32> to vector<8x128xf32>
      %31 = arith.addf %27, %30 : vector<8x128xf32>
      %c0_18 = arith.constant 0 : index
      %c0_19 = arith.constant 0 : index
      %32 = vector.load %arg7[%c0_18, %c0_19] : memref<8x128xf32, #tpu.memory_space<vmem>>, vector<8x128xf32>
      tpu.vector_store %arg7[%c0_18, %c0_19], %31 {strides = array<i32>} : memref<8x128xf32, #tpu.memory_space<vmem>>, vector<8x128xf32>,
      %c0_20 = arith.constant 0 : index
      %c0_21 = arith.constant 0 : index
      %33 = vector.load %arg8[%c0_20, %c0_21] : memref<8x128xf32, #tpu.memory_space<vmem>>, vector<8x128xf32>
      %34 = arith.mulf %16, %16 : vector<128x128xf32>
      %cst_22 = arith.constant dense<0.000000e+00> : vector<128xf32>
      %35 = vector.multi_reduction <add>, %34, %cst_22 [0] : vector<128x128xf32> to vector<128xf32>
      %36 = vector.shape_cast %35 : vector<128xf32> to vector<1x128xf32>
      %37 = vector.broadcast %36 : vector<1x128xf32> to vector<8x128xf32>
      %38 = arith.addf %33, %37 : vector<8x128xf32>
      %c0_23 = arith.constant 0 : index
      %c0_24 = arith.constant 0 : index
      %39 = vector.load %arg8[%c0_23, %c0_24] : memref<8x128xf32, #tpu.memory_space<vmem>>, vector<8x128xf32>
      tpu.vector_store %arg8[%c0_23, %c0_24], %38 {strides = array<i32>} : memref<8x128xf32, #tpu.memory_space<vmem>>, vector<8x128xf32>,
    } else {
    }
    return
  }
  func.func @transform_0(%arg0: i32, %arg1: i32) -> (i32, i32) {
    %c2_i32 = arith.constant 2 : i32
    %0 = arith.muli %arg0, %c2_i32 : i32
    %1 = arith.addi %0, %arg1 : i32
    %c0_i32 = arith.constant 0 : i32
    %c0_i32_0 = arith.constant 0 : i32
    return %1, %c0_i32 : i32, i32
  }
  func.func @transform_1(%arg0: i32, %arg1: i32) -> (i32, i32) {
    %c0_i32 = arith.constant 0 : i32
    %c0_i32_0 = arith.constant 0 : i32
    %c0_i32_1 = arith.constant 0 : i32
    return %c0_i32, %c0_i32_0 : i32, i32
  }
  func.func @transform_2(%arg0: i32, %arg1: i32) -> (i32, i32) {
    %c0_i32 = arith.constant 0 : i32
    %c0_i32_0 = arith.constant 0 : i32
    %c0_i32_1 = arith.constant 0 : i32
    return %c0_i32, %c0_i32_0 : i32, i32
  }
  func.func @transform_3(%arg0: i32, %arg1: i32) -> (i32, i32) {
    %c0_i32 = arith.constant 0 : i32
    %c0_i32_0 = arith.constant 0 : i32
    %c0_i32_1 = arith.constant 0 : i32
    return %c0_i32, %c0_i32_0 : i32, i32
  }
  func.func @transform_4(%arg0: i32, %arg1: i32) -> (i32, i32) {
    %c0_i32 = arith.constant 0 : i32
    %c0_i32_0 = arith.constant 0 : i32
    %c0_i32_1 = arith.constant 0 : i32
    return %c0_i32, %c0_i32_0 : i32, i32
  }
  func.func @transform_5(%arg0: i32, %arg1: i32) -> (i32, i32) {
    %c0_i32 = arith.constant 0 : i32
    %c0_i32_0 = arith.constant 0 : i32
    return %arg0, %c0_i32 : i32, i32
  }
  func.func @transform_6(%arg0: i32, %arg1: i32) -> (i32, i32) {
    %c0_i32 = arith.constant 0 : i32
    %c0_i32_0 = arith.constant 0 : i32
    return %arg0, %c0_i32 : i32, i32
  }
}

module attributes {stable_mosaic.version = 11 : i64} {
  func.func @kernel(%arg0: i32, %arg1: i32, %arg2: memref<128x128xbf16, #tpu.memory_space<vmem>>, %arg3: memref<128x128xbf16, #tpu.memory_space<vmem>>, %arg4: memref<1x128xf32, #tpu.memory_space<vmem>>, %arg5: memref<8x128xf32, #tpu.memory_space<vmem>>, %arg6: memref<8x128xf32, #tpu.memory_space<vmem>>) attributes {dimension_semantics = [#tpu.dimension_semantics<parallel>, #tpu.dimension_semantics<arbitrary>], iteration_bounds = array<i64: 2, 2>, scalar_prefetch = 0 : i64, scratch_operands = 0 : i64, tpu.core_type = #tpu.core_type<tc>, window_params = [{transform_indices = @transform_0, window_bounds = array<i64: 128, 128>}, {pipeline_mode = #tpu.pipeline_mode<synchronous>, transform_indices = @transform_1, window_bounds = array<i64: 128, 128>}, {pipeline_mode = #tpu.pipeline_mode<synchronous>, transform_indices = @transform_2, window_bounds = array<i64: 1, 128>}, {transform_indices = @transform_3, window_bounds = array<i64: 8, 128>}, {transform_indices = @transform_4, window_bounds = array<i64: 8, 128>}]} {
    %c0_i32 = arith.constant 0 : i32
    %0 = arith.cmpi eq, %arg1, %c0_i32 : i32
    %1 = arith.extui %0 : i1 to i32
    %c0_i32_0 = arith.constant 0 : i32
    %2 = arith.cmpi ne, %1, %c0_i32_0 : i32
    scf.if %2 {
      %cst_10 = arith.constant 0.000000e+00 : f32
      %21 = vector.broadcast %cst_10 : f32 to vector<8x128xf32>
      %c0_11 = arith.constant 0 : index
      %c0_12 = arith.constant 0 : index
      %22 = vector.load %arg5[%c0_11, %c0_12] : memref<8x128xf32, #tpu.memory_space<vmem>>, vector<8x128xf32>
      tpu.vector_store %arg5[%c0_11, %c0_12], %21 {strides = array<i32>} : memref<8x128xf32, #tpu.memory_space<vmem>>, vector<8x128xf32>,
      %cst_13 = arith.constant 0.000000e+00 : f32
      %23 = vector.broadcast %cst_13 : f32 to vector<8x128xf32>
      %c0_14 = arith.constant 0 : index
      %c0_15 = arith.constant 0 : index
      %24 = vector.load %arg6[%c0_14, %c0_15] : memref<8x128xf32, #tpu.memory_space<vmem>>, vector<8x128xf32>
      tpu.vector_store %arg6[%c0_14, %c0_15], %23 {strides = array<i32>} : memref<8x128xf32, #tpu.memory_space<vmem>>, vector<8x128xf32>,
    } else {
    }
    %c0 = arith.constant 0 : index
    %c0_1 = arith.constant 0 : index
    %3 = vector.load %arg2[%c0, %c0_1] : memref<128x128xbf16, #tpu.memory_space<vmem>>, vector<128x128xbf16>
    %c0_2 = arith.constant 0 : index
    %c0_3 = arith.constant 0 : index
    %4 = vector.load %arg3[%c0_2, %c0_3] : memref<128x128xbf16, #tpu.memory_space<vmem>>, vector<128x128xbf16>
    %cst = arith.constant dense<0.000000e+00> : vector<128x128xf32>
    %5 = tpu.matmul %3, %4, %cst {dimension_numbers = #tpu.dot_dimension_numbers<[1], [0], [0], [1], [0, 0, 1, 1], [], []>} : vector<128x128xbf16>, vector<128x128xbf16>, vector<128x128xf32> -> vector<128x128xf32>
    %c0_4 = arith.constant 0 : index
    %c0_5 = arith.constant 0 : index
    %6 = vector.load %arg4[%c0_4, %c0_5] : memref<1x128xf32, #tpu.memory_space<vmem>>, vector<1x128xf32>
    %7 = vector.broadcast %6 : vector<1x128xf32> to vector<128x128xf32>
    %8 = arith.addf %5, %7 : vector<128x128xf32>
    %cst_6 = arith.constant 0.000000e+00 : f32
    %9 = vector.broadcast %cst_6 : f32 to vector<128x128xf32>
    %10 = arith.maximumf %8, %9 : vector<128x128xf32>
    %c2_i32 = arith.constant 2 : i32
    %11 = arith.muli %arg0, %c2_i32 : i32
    %12 = arith.addi %11, %arg1 : i32
    %c128_i32 = arith.constant 128 : i32
    %13 = arith.muli %12, %c128_i32 : i32
    %c128_i32_7 = arith.constant 128 : i32
    %14 = arith.addi %13, %c128_i32_7 : i32
    %c300_i32 = arith.constant 300 : i32
    %15 = arith.cmpi sgt, %14, %c300_i32 : i32
    %16 = arith.extui %15 : i1 to i32
    %c0_i32_8 = arith.constant 0 : i32
    %17 = arith.cmpi ne, %16, %c0_i32_8 : i32
    scf.if %17 {
      %21 = tpu.iota {dimensions = array<i32: 0>} : vector<128x1xi32>
      %22 = vector.broadcast %13 : i32 to vector<128x1xi32>
      %23 = arith.addi %22, %21 : vector<128x1xi32>
      %c300_i32_10 = arith.constant 300 : i32
      %24 = vector.broadcast %c300_i32_10 : i32 to vector<128x1xi32>
      %25 = arith.cmpi slt, %23, %24 : vector<128x1xi32>
      %cst_11 = arith.constant 0.000000e+00 : f32
      %26 = vector.shape_cast %25 : vector<128x1xi1> to vector<128x1xi1>
      %27 = vector.broadcast %26 : vector<128x1xi1> to vector<128x128xi1>
      %28 = vector.broadcast %cst_11 : f32 to vector<128x128xf32>
      %29 = arith.select %27, %10, %28 : vector<128x128xi1>, vector<128x128xf32>
      %c0_12 = arith.constant 0 : index
      %c0_13 = arith.constant 0 : index
      %30 = vector.load %arg5[%c0_12, %c0_13] : memref<8x128xf32, #tpu.memory_space<vmem>>, vector<8x128xf32>
      %cst_14 = arith.constant dense<0.000000e+00> : vector<128xf32>
      %31 = vector.multi_reduction <add>, %29, %cst_14 [0] : vector<128x128xf32> to vector<128xf32>
      %32 = vector.shape_cast %31 : vector<128xf32> to vector<1x128xf32>
      %33 = vector.broadcast %32 : vector<1x128xf32> to vector<8x128xf32>
      %34 = arith.addf %30, %33 : vector<8x128xf32>
      %c0_15 = arith.constant 0 : index
      %c0_16 = arith.constant 0 : index
      %35 = vector.load %arg5[%c0_15, %c0_16] : memref<8x128xf32, #tpu.memory_space<vmem>>, vector<8x128xf32>
      tpu.vector_store %arg5[%c0_15, %c0_16], %34 {strides = array<i32>} : memref<8x128xf32, #tpu.memory_space<vmem>>, vector<8x128xf32>,
      %c0_17 = arith.constant 0 : index
      %c0_18 = arith.constant 0 : index
      %36 = vector.load %arg6[%c0_17, %c0_18] : memref<8x128xf32, #tpu.memory_space<vmem>>, vector<8x128xf32>
      %37 = arith.mulf %29, %29 : vector<128x128xf32>
      %cst_19 = arith.constant dense<0.000000e+00> : vector<128xf32>
      %38 = vector.multi_reduction <add>, %37, %cst_19 [0] : vector<128x128xf32> to vector<128xf32>
      %39 = vector.shape_cast %38 : vector<128xf32> to vector<1x128xf32>
      %40 = vector.broadcast %39 : vector<1x128xf32> to vector<8x128xf32>
      %41 = arith.addf %36, %40 : vector<8x128xf32>
      %c0_20 = arith.constant 0 : index
      %c0_21 = arith.constant 0 : index
      %42 = vector.load %arg6[%c0_20, %c0_21] : memref<8x128xf32, #tpu.memory_space<vmem>>, vector<8x128xf32>
      tpu.vector_store %arg6[%c0_20, %c0_21], %41 {strides = array<i32>} : memref<8x128xf32, #tpu.memory_space<vmem>>, vector<8x128xf32>,
    } else {
    }
    %true = arith.constant true
    %18 = arith.xori %15, %true : i1
    %19 = arith.extui %18 : i1 to i32
    %c0_i32_9 = arith.constant 0 : i32
    %20 = arith.cmpi ne, %19, %c0_i32_9 : i32
    scf.if %20 {
      %c0_10 = arith.constant 0 : index
      %c0_11 = arith.constant 0 : index
      %21 = vector.load %arg5[%c0_10, %c0_11] : memref<8x128xf32, #tpu.memory_space<vmem>>, vector<8x128xf32>
      %cst_12 = arith.constant dense<0.000000e+00> : vector<128xf32>
      %22 = vector.multi_reduction <add>, %10, %cst_12 [0] : vector<128x128xf32> to vector<128xf32>
      %23 = vector.shape_cast %22 : vector<128xf32> to vector<1x128xf32>
      %24 = vector.broadcast %23 : vector<1x128xf32> to vector<8x128xf32>
      %25 = arith.addf %21, %24 : vector<8x128xf32>
      %c0_13 = arith.constant 0 : index
      %c0_14 = arith.constant 0 : index
      %26 = vector.load %arg5[%c0_13, %c0_14] : memref<8x128xf32, #tpu.memory_space<vmem>>, vector<8x128xf32>
      tpu.vector_store %arg5[%c0_13, %c0_14], %25 {strides = array<i32>} : memref<8x128xf32, #tpu.memory_space<vmem>>, vector<8x128xf32>,
      %c0_15 = arith.constant 0 : index
      %c0_16 = arith.constant 0 : index
      %27 = vector.load %arg6[%c0_15, %c0_16] : memref<8x128xf32, #tpu.memory_space<vmem>>, vector<8x128xf32>
      %28 = arith.mulf %10, %10 : vector<128x128xf32>
      %cst_17 = arith.constant dense<0.000000e+00> : vector<128xf32>
      %29 = vector.multi_reduction <add>, %28, %cst_17 [0] : vector<128x128xf32> to vector<128xf32>
      %30 = vector.shape_cast %29 : vector<128xf32> to vector<1x128xf32>
      %31 = vector.broadcast %30 : vector<1x128xf32> to vector<8x128xf32>
      %32 = arith.addf %27, %31 : vector<8x128xf32>
      %c0_18 = arith.constant 0 : index
      %c0_19 = arith.constant 0 : index
      %33 = vector.load %arg6[%c0_18, %c0_19] : memref<8x128xf32, #tpu.memory_space<vmem>>, vector<8x128xf32>
      tpu.vector_store %arg6[%c0_18, %c0_19], %32 {strides = array<i32>} : memref<8x128xf32, #tpu.memory_space<vmem>>, vector<8x128xf32>,
    } else {
    }
    return
  }
  func.func @transform_0(%arg0: i32, %arg1: i32) -> (i32, i32) {
    %c2_i32 = arith.constant 2 : i32
    %0 = arith.muli %arg0, %c2_i32 : i32
    %1 = arith.addi %0, %arg1 : i32
    %c0_i32 = arith.constant 0 : i32
    %c0_i32_0 = arith.constant 0 : i32
    return %1, %c0_i32 : i32, i32
  }
  func.func @transform_1(%arg0: i32, %arg1: i32) -> (i32, i32) {
    %c0_i32 = arith.constant 0 : i32
    %c0_i32_0 = arith.constant 0 : i32
    %c0_i32_1 = arith.constant 0 : i32
    return %c0_i32, %c0_i32_0 : i32, i32
  }
  func.func @transform_2(%arg0: i32, %arg1: i32) -> (i32, i32) {
    %c0_i32 = arith.constant 0 : i32
    %c0_i32_0 = arith.constant 0 : i32
    %c0_i32_1 = arith.constant 0 : i32
    return %c0_i32, %c0_i32_0 : i32, i32
  }
  func.func @transform_3(%arg0: i32, %arg1: i32) -> (i32, i32) {
    %c0_i32 = arith.constant 0 : i32
    %c0_i32_0 = arith.constant 0 : i32
    return %arg0, %c0_i32 : i32, i32
  }
  func.func @transform_4(%arg0: i32, %arg1: i32) -> (i32, i32) {
    %c0_i32 = arith.constant 0 : i32
    %c0_i32_0 = arith.constant 0 : i32
    return %arg0, %c0_i32 : i32, i32
  }
}

module attributes {stable_mosaic.version = 11 : i64} {
  func.func @_out_kernel(%arg0: i32, %arg1: memref<128x128xbf16, #tpu.memory_space<vmem>>, %arg2: memref<128x128xbf16, #tpu.memory_space<vmem>>, %arg3: memref<1x128xf32, #tpu.memory_space<vmem>>, %arg4: memref<128x128xbf16, #tpu.memory_space<vmem>>, %arg5: memref<1x128xf32, #tpu.memory_space<vmem>>, %arg6: memref<128x20xbf16, #tpu.memory_space<vmem>>, %arg7: memref<1x20xf32, #tpu.memory_space<vmem>>, %arg8: memref<128x20xf32, #tpu.memory_space<vmem>>) attributes {dimension_semantics = [#tpu.dimension_semantics<parallel>], iteration_bounds = array<i64: 3>, scalar_prefetch = 0 : i64, scratch_operands = 0 : i64, tpu.core_type = #tpu.core_type<tc>, window_params = [{transform_indices = @transform_0, window_bounds = array<i64: 128, 128>}, {pipeline_mode = #tpu.pipeline_mode<synchronous>, transform_indices = @transform_1, window_bounds = array<i64: 128, 128>}, {pipeline_mode = #tpu.pipeline_mode<synchronous>, transform_indices = @transform_2, window_bounds = array<i64: 1, 128>}, {pipeline_mode = #tpu.pipeline_mode<synchronous>, transform_indices = @transform_3, window_bounds = array<i64: 128, 128>}, {pipeline_mode = #tpu.pipeline_mode<synchronous>, transform_indices = @transform_4, window_bounds = array<i64: 1, 128>}, {pipeline_mode = #tpu.pipeline_mode<synchronous>, transform_indices = @transform_5, window_bounds = array<i64: 128, 20>}, {pipeline_mode = #tpu.pipeline_mode<synchronous>, transform_indices = @transform_6, window_bounds = array<i64: 1, 20>}, {transform_indices = @transform_7, window_bounds = array<i64: 128, 20>}]} {
    %c0 = arith.constant 0 : index
    %c0_0 = arith.constant 0 : index
    %0 = vector.load %arg1[%c0, %c0_0] : memref<128x128xbf16, #tpu.memory_space<vmem>>, vector<128x128xbf16>
    %c0_1 = arith.constant 0 : index
    %c0_2 = arith.constant 0 : index
    %1 = vector.load %arg2[%c0_1, %c0_2] : memref<128x128xbf16, #tpu.memory_space<vmem>>, vector<128x128xbf16>
    %cst = arith.constant dense<0.000000e+00> : vector<128x128xf32>
    %2 = tpu.matmul %0, %1, %cst {dimension_numbers = #tpu.dot_dimension_numbers<[1], [0], [0], [1], [0, 0, 1, 1], [], []>} : vector<128x128xbf16>, vector<128x128xbf16>, vector<128x128xf32> -> vector<128x128xf32>
    %c0_3 = arith.constant 0 : index
    %c0_4 = arith.constant 0 : index
    %3 = vector.load %arg3[%c0_3, %c0_4] : memref<1x128xf32, #tpu.memory_space<vmem>>, vector<1x128xf32>
    %4 = vector.broadcast %3 : vector<1x128xf32> to vector<128x128xf32>
    %5 = arith.addf %2, %4 : vector<128x128xf32>
    %cst_5 = arith.constant 0.000000e+00 : f32
    %6 = vector.broadcast %cst_5 : f32 to vector<128x128xf32>
    %7 = arith.maximumf %5, %6 : vector<128x128xf32>
    %8 = arith.truncf %7 : vector<128x128xf32> to vector<128x128xbf16>
    %c0_6 = arith.constant 0 : index
    %c0_7 = arith.constant 0 : index
    %9 = vector.load %arg4[%c0_6, %c0_7] : memref<128x128xbf16, #tpu.memory_space<vmem>>, vector<128x128xbf16>
    %cst_8 = arith.constant dense<0.000000e+00> : vector<128x128xf32>
    %10 = tpu.matmul %8, %9, %cst_8 {dimension_numbers = #tpu.dot_dimension_numbers<[1], [0], [0], [1], [0, 0, 1, 1], [], []>} : vector<128x128xbf16>, vector<128x128xbf16>, vector<128x128xf32> -> vector<128x128xf32>
    %c0_9 = arith.constant 0 : index
    %c0_10 = arith.constant 0 : index
    %11 = vector.load %arg5[%c0_9, %c0_10] : memref<1x128xf32, #tpu.memory_space<vmem>>, vector<1x128xf32>
    %12 = vector.broadcast %11 : vector<1x128xf32> to vector<128x128xf32>
    %13 = arith.addf %10, %12 : vector<128x128xf32>
    %14 = arith.truncf %13 : vector<128x128xf32> to vector<128x128xbf16>
    %c0_11 = arith.constant 0 : index
    %c0_12 = arith.constant 0 : index
    %15 = vector.load %arg6[%c0_11, %c0_12] : memref<128x20xbf16, #tpu.memory_space<vmem>>, vector<128x20xbf16>
    %cst_13 = arith.constant dense<0.000000e+00> : vector<128x20xf32>
    %16 = tpu.matmul %14, %15, %cst_13 {dimension_numbers = #tpu.dot_dimension_numbers<[1], [0], [0], [1], [0, 0, 1, 1], [], []>} : vector<128x128xbf16>, vector<128x20xbf16>, vector<128x20xf32> -> vector<128x20xf32>
    %c0_14 = arith.constant 0 : index
    %c0_15 = arith.constant 0 : index
    %17 = vector.load %arg7[%c0_14, %c0_15] : memref<1x20xf32, #tpu.memory_space<vmem>>, vector<1x20xf32>
    %18 = vector.broadcast %17 : vector<1x20xf32> to vector<128x20xf32>
    %19 = arith.addf %16, %18 : vector<128x20xf32>
    %c0_16 = arith.constant 0 : index
    %c0_17 = arith.constant 0 : index
    %20 = vector.load %arg8[%c0_16, %c0_17] : memref<128x20xf32, #tpu.memory_space<vmem>>, vector<128x20xf32>
    tpu.vector_store %arg8[%c0_16, %c0_17], %19 {strides = array<i32>} : memref<128x20xf32, #tpu.memory_space<vmem>>, vector<128x20xf32>,
    return
  }
  func.func @transform_0(%arg0: i32) -> (i32, i32) {
    %c0_i32 = arith.constant 0 : i32
    %c0_i32_0 = arith.constant 0 : i32
    return %arg0, %c0_i32 : i32, i32
  }
  func.func @transform_1(%arg0: i32) -> (i32, i32) {
    %c0_i32 = arith.constant 0 : i32
    %c0_i32_0 = arith.constant 0 : i32
    %c0_i32_1 = arith.constant 0 : i32
    return %c0_i32, %c0_i32_0 : i32, i32
  }
  func.func @transform_2(%arg0: i32) -> (i32, i32) {
    %c0_i32 = arith.constant 0 : i32
    %c0_i32_0 = arith.constant 0 : i32
    %c0_i32_1 = arith.constant 0 : i32
    return %c0_i32, %c0_i32_0 : i32, i32
  }
  func.func @transform_3(%arg0: i32) -> (i32, i32) {
    %c0_i32 = arith.constant 0 : i32
    %c0_i32_0 = arith.constant 0 : i32
    %c0_i32_1 = arith.constant 0 : i32
    return %c0_i32, %c0_i32_0 : i32, i32
  }
  func.func @transform_4(%arg0: i32) -> (i32, i32) {
    %c0_i32 = arith.constant 0 : i32
    %c0_i32_0 = arith.constant 0 : i32
    %c0_i32_1 = arith.constant 0 : i32
    return %c0_i32, %c0_i32_0 : i32, i32
  }
  func.func @transform_5(%arg0: i32) -> (i32, i32) {
    %c0_i32 = arith.constant 0 : i32
    %c0_i32_0 = arith.constant 0 : i32
    %c0_i32_1 = arith.constant 0 : i32
    return %c0_i32, %c0_i32_0 : i32, i32
  }
  func.func @transform_6(%arg0: i32) -> (i32, i32) {
    %c0_i32 = arith.constant 0 : i32
    %c0_i32_0 = arith.constant 0 : i32
    %c0_i32_1 = arith.constant 0 : i32
    return %c0_i32, %c0_i32_0 : i32, i32
  }
  func.func @transform_7(%arg0: i32) -> (i32, i32) {
    %c0_i32 = arith.constant 0 : i32
    %c0_i32_0 = arith.constant 0 : i32
    return %arg0, %c0_i32 : i32, i32
  }
}

</mosaic_0001>

<bundles_post_ra>
// kernel: tpu_custom_call.1
= control target key start
LH: loop header
LB: loop body
LE: loop exit
PB: predicated region body
PF: predicated region fallthrough
CT: control target
= control target key end

     0   :  { %6 = vsyncpa [#allocation3], 0  ;;  %s115_s0 = inlined_call_operand.hbm [shape: f32[8,128], index: 0, kind: input, shape index: {}]   ;;  %s116_s1 = inlined_call_operand.hbm [shape: f32[8,128], index: 1, kind: output, shape index: {}]  }
   0x1   :  { %7 = vsyncpa [#allocation4], 0  ;;  %s13_s8 = sshll.u32 %s115_s0, 4  ;;  %s97_s9 = smov [#allocation2]   ;;  %s14_s8 = int_to_ptr.hbm [resolvable:$true] %s13_s8 }
   0x2   :  { %s15_s10 = sshll.u32 %s97_s9, 4  ;;  %s16_s10 = int_to_ptr.vmem [resolvable:$true] %s15_s10 }
   0x3   :  { %18 = dma.hbm_to_vmem [thread:$0]  %s14_s8, 128, %s16_s10, [#allocation3]  }
   0x4   :  { %93 = dma.done.wait [#allocation3], 128  }
   0x5   :  { %94 = vsyncadd [#allocation3], 4294967168  ;;  %s98_s11 = smov [#allocation5]   ;;  %s33_s15 = sshll.u32 %s116_s1, 4  ;;  %v23_v0 = vld [vmem:[#allocation2] sm:$0xff]  ;;  %s34_s15 = int_to_ptr.hbm [resolvable:$true] %s33_s15 }
   0x6   :  { %s31_s12 = sshll.u32 %s98_s11, 4  ;;  %v24_v1 = vadd.f32 1.0, %v23_v0  ;;  %s32_s12 = int_to_ptr.vmem [resolvable:$true] %s31_s12 }
   0x8   :  { %25 = vst [vmem:[#allocation5] sm:$0xff] %v24_v1 }
   0x9   :  { %36 = dma.vmem_to_hbm [thread:$0]  %s32_s12, 128, %s34_s15, [#allocation4]  }
   0xa   :  { %95 = dma.done.wait [#allocation4], 128  }
   0xb   :  { %96 = vsyncadd [#allocation4], 4294967168 }
   0xc   :  { %41 = vsyncpa [#allocation3], 1 }
   0xd   :  { %42 = vsyncpa [#allocation4], 1 }

// kernel: _forward_impl.4
= control target key start
LH: loop header
LB: loop body
LE: loop exit
PB: predicated region body
PF: predicated region fallthrough
CT: control target
= control target key end

     0   :  { %s1224_s21 = smov 0   ;;  %s1226_s22 = smov 0   ;;  %s1500_s0 = inlined_call_operand.vmem [shape: bf16[512,128], index: 0, kind: input, shape index: {}]   ;;  %s1501_s1 = inlined_call_operand.vmem [shape: bf16[128,128], index: 1, kind: input, shape index: {}]   ;;  %s1502_s2 = inlined_call_operand.vmem [shape: f32[1,128], index: 2, kind: input, shape index: {}]   ;;  %s1503_s3 = inlined_call_operand.vmem [shape: bf16[128,128], index: 3, kind: input, shape index: {}]   ;;  %s1504_s4 = inlined_call_operand.vmem [shape: f32[1,128], index: 4, kind: input, shape index: {}]   ;;  %s1505_s5 = inlined_call_operand.vmem [shape: f32[16,128], index: 5, kind: output, shape index: {0}]   ;;  %s1506_s6 = inlined_call_operand.vmem [shape: f32[16,128], index: 6, kind: output, shape index: {1}]  }
   0x1   :  { %s1228_s23 = smov 0   ;;  %s1230_s24 = smov 0  }
   0x2   :  { %s1232_s25 = smov 0  }
   0x3 LB: > { %s26_s26 = sadd.s32 1, %s1178_s23  ;;  %s29_s27 = sadd.s32 1, %s1182_s24  ;;  %s1186_s25 = sphi %s1232_s25, %s17_s25   ;;  %s1182_s24 = sphi %s1230_s24, %s1510_s24   ;;  %s1178_s23 = sphi %s1228_s23, %s1509_s23   ;;  %s1174_s22 = sphi %s1226_s22, %s1508_s22   ;;  %s1170_s21 = sphi %s1224_s21, %s1507_s21  }
   0x4   : > { %p27_p0 = scmp.ge.s32.totalorder %s26_s26, 2  ;;  %p956_p1 = scmp.ge.s32.totalorder %s1186_s25, 1 }
   0x5   : > { %p236_p2 = scmp.lt.s32.totalorder %s1186_s25, 5 }
   0x6   : > { %s1512_s26 = smov (%p27_p0, %s26_s26), 0  ;;  %s1514_s27 = smov (!%p27_p0, %s29_s27), %s1182_s24 }
   0x7   : > { %p237_p3 = pnand %p956_p1, %p236_p2  ;;  %p31_p4 = scmp.ge.s32.totalorder %s1514_s27, 2 }
   0x8   : > { %s957_s28 = sshll.u32 (!%p237_p3), %s1174_s22, 1  ;;  %p281_p5 = scmp.lt.s32.totalorder (!%p237_p3), %s1174_s22, 1 }
   0x9   : > { %s1516_s27 = smov (%p31_p4, %s1514_s27), 0  ;;  %240 = sbr.rel (%p237_p3) target bundleno = 504 (0x1f8), region = 40 }
   0xa   : > { %s1254_s29 = sadd.s32 (!%p237_p3), %s1170_s21, %s957_s28  ;;  %p962_p7 = scmp.ne.s32.totalorder (!%p237_p3), %s1170_s21, 0 }
   0xb   : > { %s958_s30 = sshll.u32 (!%p237_p3), %s1254_s29, 4 }
   0xc   : > { %p274_p6 = scmp.lt.s32.totalorder (!%p237_p3), %s958_s30, 63 }
   0xe   : > { %s1518_s22 = smov (!%p281_p5, %s1174_s22), 1  ;;  %s1520_s30 = smov (!%p274_p6, %s958_s30), 63 }
   0xf   : > { %s960_s7 = sshll.u32 %s1518_s22, 3  ;;  %s959_s8 = sshll.u32 %s1520_s30, 2 }
  0x10   : > { %s1260_s11 = scalar_lea.vmem %s1505_s5, %s960_s7  ;;  %s1265_s14 = scalar_lea.vmem %s1500_s0, %s959_s8 }
  0x11   : > { %s1270_s17 = scalar_lea.vmem %s1506_s6, %s960_s7  ;;  %292 = sbr.rel (%p962_p7) target bundleno = 25 (0x19), region = 44 }
  0x16   : > { %v1188_v0 = vmov 0.0  }
  0x17   : > { %293 = vst [vmem:[%s1260_s11] sm:$0xff] %v1188_v0 }
  0x18   : > { %294 = vst [vmem:[%s1270_s17] sm:$0xff] %v1188_v0 }
  0x19 PF: > { %v1080_v1 = vld [vmem:[%s1501_s1 + $0x38] sm:$0xff]  ;;  %v1079_v2 = vld [vmem:[%s1501_s1 + $0x30] sm:$0xff]  ;;  %v1078_v3 = vld [vmem:[%s1501_s1 + $0x28] sm:$0xff]  ;;  %s1060_s22 = sshll.u32 %s1254_s29, 7 }
  0x1a   : > { %427 = vmatpush.bf16.msra.mxu0 %v1080_v1  ;;  %1089 = vmatpush.bf16.msra.mxu2 %v1080_v1  ;;  %v1077_v4 = vld [vmem:[%s1501_s1 + $0x20] sm:$0xff]  ;;  %v1076_v5 = vld [vmem:[%s1501_s1 + $0x18] sm:$0xff]  ;;  %v1075_v6 = vld [vmem:[%s1501_s1 + $0x10] sm:$0xff]  ;;  %s1336_s21 = sadd.s32 128, %s1060_s22 }
  0x1b   : > { %v1074_v7 = vld [vmem:[%s1501_s1 + $0x8] sm:$0xff]  ;;  %v1073_v8 = vld [vmem:[%s1501_s1] sm:$0xff]  ;;  %v1088_v13 = vld [vmem:[%s1503_s3 + $0x38] sm:$0xff]  ;;  %p1061_p8 = scmp.le.s32.totalorder %s1336_s21, 300 }
  0x1c   : > { %v1065_v9 = vld [vmem:[%s1265_s14] sm:$0xff]  ;;  %v1066_v11 = vld [vmem:[%s1265_s14 + $0x8] sm:$0xff]  ;;  %568 = vmatpush.bf16.msra.mxu1 %v1088_v13  ;;  %v1087_v14 = vld [vmem:[%s1503_s3 + $0x30] sm:$0xff]  ;;  %1097 = vmatpush.bf16.msra.mxu3 %v1088_v13 }
  0x1d   : > { %v1069_v10 = vld [vmem:[%s1265_s14 + $0x20] sm:$0xff]  ;;  %v1070_v12 = vld [vmem:[%s1265_s14 + $0x28] sm:$0xff]  ;;  %v1067_v17 = vld [vmem:[%s1265_s14 + $0x10] sm:$0xff] }
  0x1e   : > { %428 = vmatpush.bf16.msra.mxu0 %v1079_v2  ;;  %1090 = vmatpush.bf16.msra.mxu2 %v1079_v2  ;;  %v1086_v15 = vld [vmem:[%s1503_s3 + $0x28] sm:$0xff]  ;;  %v1085_v16 = vld [vmem:[%s1503_s3 + $0x20] sm:$0xff]  ;;  %v1071_v18 = vld [vmem:[%s1265_s14 + $0x30] sm:$0xff] }
  0x1f   : > { %v1068_v19 = vld [vmem:[%s1265_s14 + $0x18] sm:$0xff]  ;;  %v1083_v22 = vld [vmem:[%s1503_s3 + $0x10] sm:$0xff]  ;;  %v1082_v23 = vld [vmem:[%s1503_s3 + $0x8] sm:$0xff] }
  0x20   : > { %569 = vmatpush.bf16.msra.mxu1 %v1087_v14  ;;  %1098 = vmatpush.bf16.msra.mxu3 %v1087_v14  ;;  %v1072_v20 = vld [vmem:[%s1265_s14 + $0x38] sm:$0xff]  ;;  %v1081_v24 = vld [vmem:[%s1503_s3] sm:$0xff] }
  0x21   : > { %v1084_v21 = vld [vmem:[%s1503_s3 + $0x18] sm:$0xff]  ;;  %v1146_v26 = vld [vmem:[%s1502_s2] ss:$0 sm:$0xff] }
  0x22   : > { %429 = vmatpush.bf16.msra.mxu0 %v1078_v3  ;;  %1091 = vmatpush.bf16.msra.mxu2 %v1078_v3 }
  0x24   : > { %570 = vmatpush.bf16.msra.mxu1 %v1086_v15  ;;  %1099 = vmatpush.bf16.msra.mxu3 %v1086_v15 }
  0x26   : > { %430 = vmatpush.bf16.msra.mxu0 %v1077_v4  ;;  %1092 = vmatpush.bf16.msra.mxu2 %v1077_v4 }
  0x28   : > { %571 = vmatpush.bf16.msra.mxu1 %v1085_v16  ;;  %1100 = vmatpush.bf16.msra.mxu3 %v1085_v16 }
  0x2a   : > { %431 = vmatpush.bf16.msra.mxu0 %v1076_v5  ;;  %1093 = vmatpush.bf16.msra.mxu2 %v1076_v5 }
  0x2c   : > { %572 = vmatpush.bf16.msra.mxu1 %v1084_v21  ;;  %1101 = vmatpush.bf16.msra.mxu3 %v1084_v21 }
  0x2e   : > { %432 = vmatpush.bf16.msra.mxu0 %v1075_v6  ;;  %1094 = vmatpush.bf16.msra.mxu2 %v1075_v6 }
  0x30   : > { %573 = vmatpush.bf16.msra.mxu1 %v1083_v22  ;;  %1102 = vmatpush.bf16.msra.mxu3 %v1083_v22 }
  0x32   : > { %433 = vmatpush.bf16.msra.mxu0 %v1074_v7  ;;  %1095 = vmatpush.bf16.msra.mxu2 %v1074_v7 }
  0x34   : > { %574 = vmatpush.bf16.msra.mxu1 %v1082_v23  ;;  %1103 = vmatpush.bf16.msra.mxu3 %v1082_v23 }
  0x36   : > { %434 = vmatpush.bf16.msra.mxu0 %v1073_v8  ;;  %1096 = vmatpush.bf16.msra.mxu2 %v1073_v8 }
  0x38   : > { %575 = vmatpush.bf16.msra.mxu1 %v1081_v24  ;;  %1104 = vmatpush.bf16.msra.mxu3 %v1081_v24 }
  0x39   : > { %435 = vmatmul.bf16.vlgmr.msra.gmra.mxu0 %v1065_v9  ;;  %455 = vmatmul.bf16.vlgmr.msra.gmra.mxu2 %v1069_v10 }
  0x49   : > { %440 = vmatmul.bf16.gmra.mxu0 %v1066_v11  ;;  %460 = vmatmul.bf16.gmra.mxu2 %v1070_v12 }
  0x59   : > { %445 = vmatmul.bf16.gmra.mxu0 %v1067_v17  ;;  %465 = vmatmul.bf16.gmra.mxu2 %v1071_v18  ;;  %v1147_v18 = vld [vmem:[%s1504_s4] ss:$0 sm:$0xff] }
  0x69   : > { %450 = vmatmul.bf16.gmra.mxu0 %v1068_v19  ;;  %470 = vmatmul.bf16.gmra.mxu2 %v1072_v20 }
  0xb6   : > { %v436_v25 = vpop.f32.mrf.mxu0 }
  0xb7   : > { %v437_v27 = vadd.f32 %v1146_v26, %v436_v25 }
  0xb9   : > { %v476_v30 = vmax.f32 %v437_v27, 0.0 }
  0xbc   : > { %v456_v28 = vpop.f32.mrf.mxu2 }
  0xbd   : > { %v457_v33 = vadd.f32 %v1146_v26, %v456_v28 }
  0xbe   : > { %v438_v29 = vpop.f32.mrf.mxu0 }
  0xbf   : > { %v439_v31 = vadd.f32 %v1146_v26, %v438_v29  ;;  %v484_v38 = vmax.f32 %v457_v33, 0.0 }
  0xc1   : > { %v477_v32 = vmax.f32 %v439_v31, 0.0 }
  0xc3   : > { %v492_v34 = vpack.c.bf16 %v477_v32, %v476_v30 }
  0xc4   : > { %v458_v35 = vpop.f32.mrf.mxu2 }
  0xc5   : > { %v459_v36 = vadd.f32 %v1146_v26, %v458_v35  ;;  %576 = vmatmul.bf16.vlgmr.msra.gmra.mxu1 %v492_v34 }
  0xc6   : > { %v441_v37 = vpop.f32.mrf.mxu0 }
  0xc7   : > { %v485_v39 = vmax.f32 %v459_v36, 0.0  ;;  %v442_v41 = vadd.f32 %v1146_v26, %v441_v37 }
  0xc9   : > { %v496_v40 = vpack.c.bf16 %v485_v39, %v484_v38  ;;  %v478_v44 = vmax.f32 %v442_v41, 0.0 }
  0xcb   : > { %596 = vmatmul.bf16.vlgmr.msra.gmra.mxu3 %v496_v40 }
  0xcc   : > { %v461_v42 = vpop.f32.mrf.mxu2 }
  0xcd   : > { %v462_v47 = vadd.f32 %v1146_v26, %v461_v42 }
  0xce   : > { %v443_v43 = vpop.f32.mrf.mxu0 }
  0xcf   : > { %v444_v45 = vadd.f32 %v1146_v26, %v443_v43  ;;  %v486_v52 = vmax.f32 %v462_v47, 0.0 }
  0xd1   : > { %v479_v46 = vmax.f32 %v444_v45, 0.0 }
  0xd3   : > { %v493_v48 = vpack.c.bf16 %v479_v46, %v478_v44 }
  0xd4   : > { %v463_v49 = vpop.f32.mrf.mxu2 }
  0xd5   : > { %v464_v50 = vadd.f32 %v1146_v26, %v463_v49  ;;  %581 = vmatmul.bf16.gmra.mxu1 %v493_v48 }
  0xd6   : > { %v446_v51 = vpop.f32.mrf.mxu0 }
  0xd7   : > { %v487_v53 = vmax.f32 %v464_v50, 0.0  ;;  %v447_v55 = vadd.f32 %v1146_v26, %v446_v51 }
  0xd9   : > { %v497_v54 = vpack.c.bf16 %v487_v53, %v486_v52  ;;  %v480_v58 = vmax.f32 %v447_v55, 0.0 }
  0xdb   : > { %601 = vmatmul.bf16.gmra.mxu3 %v497_v54 }
  0xdc   : > { %v466_v56 = vpop.f32.mrf.mxu2 }
  0xdd   : > { %v467_v61 = vadd.f32 %v1146_v26, %v466_v56 }
  0xde   : > { %v448_v57 = vpop.f32.mrf.mxu0 }
  0xdf   : > { %v449_v59 = vadd.f32 %v1146_v26, %v448_v57  ;;  %v488_v2 = vmax.f32 %v467_v61, 0.0 }
  0xe1   : > { %v481_v60 = vmax.f32 %v449_v59, 0.0 }
  0xe3   : > { %v494_v62 = vpack.c.bf16 %v481_v60, %v480_v58 }
  0xe4   : > { %v468_v63 = vpop.f32.mrf.mxu2 }
  0xe5   : > { %v469_v0 = vadd.f32 %v1146_v26, %v468_v63  ;;  %586 = vmatmul.bf16.gmra.mxu1 %v494_v62 }
  0xe6   : > { %v451_v1 = vpop.f32.mrf.mxu0 }
  0xe7   : > { %v489_v3 = vmax.f32 %v469_v0, 0.0  ;;  %v452_v5 = vadd.f32 %v1146_v26, %v451_v1 }
  0xe9   : > { %v498_v4 = vpack.c.bf16 %v489_v3, %v488_v2  ;;  %v482_v8 = vmax.f32 %v452_v5, 0.0 }
  0xeb   : > { %606 = vmatmul.bf16.gmra.mxu3 %v498_v4 }
  0xec   : > { %v471_v6 = vpop.f32.mrf.mxu2 }
  0xed   : > { %v472_v11 = vadd.f32 %v1146_v26, %v471_v6 }
  0xee   : > { %v453_v7 = vpop.f32.mrf.mxu0 }
  0xef   : > { %v454_v9 = vadd.f32 %v1146_v26, %v453_v7  ;;  %v490_v15 = vmax.f32 %v472_v11, 0.0 }
  0xf1   : > { %v483_v10 = vmax.f32 %v454_v9, 0.0 }
  0xf3   : > { %v495_v12 = vpack.c.bf16 %v483_v10, %v482_v8 }
  0xf4   : > { %v473_v13 = vpop.f32.mrf.mxu2 }
  0xf5   : > { %v474_v14 = vadd.f32 %v1146_v26, %v473_v13  ;;  %591 = vmatmul.bf16.gmra.mxu1 %v495_v12 }
  0xf7   : > { %v491_v16 = vmax.f32 %v474_v14, 0.0 }
  0xf9   : > { %v499_v17 = vpack.c.bf16 %v491_v16, %v490_v15 }
  0xfb   : > { %611 = vmatmul.bf16.gmra.mxu3 %v499_v17 }
 0x142   : > { %v577_v19 = vpop.f32.mrf.mxu1 }
 0x143   : > { %v1341_v20 = vadd.f32 %v1147_v18, %v577_v19 }
 0x14a   : > { %v579_v21 = vpop.f32.mrf.mxu1 }
 0x14b   : > { %v1343_v22 = vadd.f32 %v1147_v18, %v579_v21 }
 0x14e   : > { %v597_v23 = vpop.f32.mrf.mxu3 }
 0x14f   : > { %v1345_v24 = vadd.f32 %v1147_v18, %v597_v23 }
 0x152   : > { %v582_v25 = vpop.f32.mrf.mxu1 }
 0x153   : > { %v1347_v26 = vadd.f32 %v1147_v18, %v582_v25 }
 0x156   : > { %v599_v27 = vpop.f32.mrf.mxu3 }
 0x157   : > { %v1349_v28 = vadd.f32 %v1147_v18, %v599_v27 }
 0x15a   : > { %v584_v29 = vpop.f32.mrf.mxu1 }
 0x15b   : > { %v1351_v30 = vadd.f32 %v1147_v18, %v584_v29 }
 0x15e   : > { %v602_v31 = vpop.f32.mrf.mxu3 }
 0x15f   : > { %v1353_v32 = vadd.f32 %v1147_v18, %v602_v31 }
 0x162   : > { %v587_v33 = vpop.f32.mrf.mxu1 }
 0x163   : > { %v1355_v34 = vadd.f32 %v1147_v18, %v587_v33 }
 0x166   : > { %v604_v35 = vpop.f32.mrf.mxu3 }
 0x167   : > { %v1357_v36 = vadd.f32 %v1147_v18, %v604_v35 }
 0x16a   : > { %v589_v37 = vpop.f32.mrf.mxu1 }
 0x16b   : > { %v1359_v38 = vadd.f32 %v1147_v18, %v589_v37 }
 0x16e   : > { %v607_v39 = vpop.f32.mrf.mxu3 }
 0x16f   : > { %v1361_v40 = vadd.f32 %v1147_v18, %v607_v39 }
 0x172   : > { %v592_v41 = vpop.f32.mrf.mxu1 }
 0x173   : > { %v1363_v42 = vadd.f32 %v1147_v18, %v592_v41 }
 0x176   : > { %v609_v43 = vpop.f32.mrf.mxu3 }
 0x177   : > { %v1365_v44 = vadd.f32 %v1147_v18, %v609_v43 }
 0x17a   : > { %v594_v45 = vpop.f32.mrf.mxu1 }
 0x17b   : > { %v1367_v46 = vadd.f32 %v1147_v18, %v594_v45 }
 0x17e   : > { %v612_v47 = vpop.f32.mrf.mxu3 }
 0x17f   : > { %v1369_v48 = vadd.f32 %v1147_v18, %v612_v47 }
 0x183   : > { %624 = sbr.rel (%p1061_p8) target bundleno = 450 (0x1c2), region = 48 }
 0x186   : > { %v614_v49 = vpop.f32.mrf.mxu3 }
 0x187   : > { %v1371_v50 = vadd.f32 %v1147_v18, %v614_v49 }
 0x188   : > { %v625_v51 = vlaneseq  ;;  %v1379_v54 = vstv %s1060_s22 }
 0x18a   : > { %v1374_v52 = vshrl.u32 %v625_v51, 7 }
 0x18c   : > { %v627_v53 = vadd.s32 8, %v1374_v52  ;;  %v628_v55 = vadd.s32 16, %v1374_v52  ;;  %v629_v56 = vadd.s32 24, %v1374_v52  ;;  %v643_v57 = vadd.s32 %v1379_v54, %v1374_v52 }
 0x18d   : > { %v630_v59 = vadd.s32 32, %v1374_v52  ;;  %v631_v61 = vadd.s32 40, %v1374_v52  ;;  %v632_v63 = vadd.s32 48, %v1374_v52  ;;  %v633_v3 = vadd.s32 56, %v1374_v52 }
 0x18e   : > { %v644_v58 = vadd.s32 %v1379_v54, %v627_v53  ;;  %v645_v60 = vadd.s32 %v1379_v54, %v628_v55  ;;  %v646_v62 = vadd.s32 %v1379_v54, %v629_v56  ;;  %vm659_vm0 = vcmp.lt.s32.totalorder %v643_v57, 300 }
 0x18f   : > { %v647_v0 = vadd.s32 %v1379_v54, %v630_v59  ;;  %v707_v1 = vsel %vm659_vm0, %v1341_v20, 0.0  ;;  %v648_v4 = vadd.s32 %v1379_v54, %v631_v61  ;;  %v634_v5 = vadd.s32 64, %v1374_v52 }
 0x190   : > { %vm660_vm1 = vcmp.lt.s32.totalorder %v644_v58, 300  ;;  %vm661_vm2 = vcmp.lt.s32.totalorder %v645_v60, 300  ;;  %vm662_vm3 = vcmp.lt.s32.totalorder %v646_v62, 300  ;;  %v649_v8 = vadd.s32 %v1379_v54, %v632_v63 }
 0x191   : > { %v708_v2 = vsel %vm660_vm1, %v1343_v22, 0.0  ;;  %v709_v6 = vsel %vm661_vm2, %v1347_v26, 0.0  ;;  %vm663_vm4 = vcmp.lt.s32.totalorder %v647_v0, 300  ;;  %v748_v9 = vmul.f32 %v707_v1, %v707_v1 }
 0x192   : > { %v724_v7 = vadd.f32 %v708_v2, %v707_v1  ;;  %v749_v10 = vmul.f32 %v708_v2, %v708_v2  ;;  %v710_v11 = vsel %vm662_vm3, %v1351_v30, 0.0  ;;  %v635_v13 = vadd.s32 72, %v1374_v52 }
 0x193   : > { %v650_v14 = vadd.s32 %v1379_v54, %v633_v3  ;;  %vm664_vm5 = vcmp.lt.s32.totalorder %v648_v4, 300  ;;  %v750_v15 = vmul.f32 %v709_v6, %v709_v6  ;;  %v636_v16 = vadd.s32 80, %v1374_v52 }
 0x194   : > { %v725_v12 = vadd.f32 %v724_v7, %v709_v6  ;;  %v711_v17 = vsel %vm663_vm4, %v1355_v34, 0.0  ;;  %v651_v19 = vadd.s32 %v1379_v54, %v634_v5  ;;  %vm665_vm6 = vcmp.lt.s32.totalorder %v649_v8, 300 }
 0x195   : > { %v751_v21 = vmul.f32 %v710_v11, %v710_v11  ;;  %v764_v23 = vadd.f32 %v749_v10, %v748_v9  ;;  %v637_v25 = vadd.s32 88, %v1374_v52  ;;  %v712_v27 = vsel %vm664_vm5, %v1359_v38, 0.0 }
 0x196   : > { %v726_v18 = vadd.f32 %v725_v12, %v710_v11  ;;  %v652_v31 = vadd.s32 %v1379_v54, %v635_v13  ;;  %vm666_vm7 = vcmp.lt.s32.totalorder %v650_v14, 300  ;;  %v752_v33 = vmul.f32 %v711_v17, %v711_v17 }
 0x197   : > { %v765_v35 = vadd.f32 %v764_v23, %v750_v15  ;;  %v638_v37 = vadd.s32 96, %v1374_v52  ;;  %v713_v39 = vsel %vm665_vm6, %v1363_v42, 0.0  ;;  %v653_v43 = vadd.s32 %v1379_v54, %v636_v16 }
 0x198   : > { %v727_v29 = vadd.f32 %v726_v18, %v711_v17  ;;  %vm667_vm8 = vcmp.lt.s32.totalorder %v651_v19, 300  ;;  %v753_v45 = vmul.f32 %v712_v27, %v712_v27  ;;  %v639_v49 = vadd.s32 104, %v1374_v52 }
 0x199   : > { %v766_v47 = vadd.f32 %v765_v35, %v751_v21  ;;  %v714_v51 = vsel %vm666_vm7, %v1367_v46, 0.0  ;;  %v654_v55 = vadd.s32 %v1379_v54, %v637_v25  ;;  %vm668_vm9 = vcmp.lt.s32.totalorder %v652_v31, 300 }
 0x19a   : > { %v728_v41 = vadd.f32 %v727_v29, %v712_v27  ;;  %v754_v56 = vmul.f32 %v713_v39, %v713_v39  ;;  %v640_v58 = vadd.s32 112, %v1374_v52  ;;  %v715_v59 = vsel %vm667_vm8, %v1345_v24, 0.0 }
 0x19b   : > { %v767_v57 = vadd.f32 %v766_v47, %v752_v33  ;;  %v655_v61 = vadd.s32 %v1379_v54, %v638_v37  ;;  %vm669_vm10 = vcmp.lt.s32.totalorder %v653_v43, 300  ;;  %v755_v62 = vmul.f32 %v714_v51, %v714_v51 }
 0x19c   : > { %v729_v53 = vadd.f32 %v728_v41, %v713_v39  ;;  %v641_v0 = vadd.s32 120, %v1374_v52  ;;  %v716_v1 = vsel %vm668_vm9, %v1349_v28, 0.0  ;;  %v656_v3 = vadd.s32 %v1379_v54, %v639_v49 }
 0x19d   : > { %v768_v63 = vadd.f32 %v767_v57, %v753_v45  ;;  %vm670_vm11 = vcmp.lt.s32.totalorder %v654_v55, 300  ;;  %v756_v4 = vmul.f32 %v715_v59, %v715_v59  ;;  %v717_v6 = vsel %vm669_vm10, %v1353_v32, 0.0 }
 0x19e   : > { %v730_v60 = vadd.f32 %v729_v53, %v714_v51  ;;  %v657_v8 = vadd.s32 %v1379_v54, %v640_v58  ;;  %vm671_vm12 = vcmp.lt.s32.totalorder %v655_v61, 300  ;;  %v757_v9 = vmul.f32 %v716_v1, %v716_v1 }
 0x19f   : > { %v769_v5 = vadd.f32 %v768_v63, %v754_v56  ;;  %v718_v11 = vsel %vm670_vm11, %v1357_v36, 0.0  ;;  %v658_v52 = vadd.s32 %v1379_v54, %v641_v0  ;;  %vm672_vm13 = vcmp.lt.s32.totalorder %v656_v3, 300 }
 0x1a0   : > { %v731_v2 = vadd.f32 %v730_v60, %v715_v59  ;;  %v758_v13 = vmul.f32 %v717_v6, %v717_v6  ;;  %v719_v15 = vsel %vm671_vm12, %v1361_v40, 0.0  ;;  %vm673_vm14 = vcmp.lt.s32.totalorder %v657_v8, 300  ;;  %v723_v60 = vld [vmem:[%s1260_s11] sm:$0xff] }
 0x1a1   : > { %v770_v10 = vadd.f32 %v769_v5, %v755_v62  ;;  %v759_v17 = vmul.f32 %v718_v11, %v718_v11  ;;  %v720_v19 = vsel %vm672_vm13, %v1365_v44, 0.0  ;;  %vm674_vm15 = vcmp.lt.s32.totalorder %v658_v52, 300 }
 0x1a2   : > { %v732_v7 = vadd.f32 %v731_v2, %v716_v1  ;;  %v760_v23 = vmul.f32 %v719_v15, %v719_v15  ;;  %v721_v27 = vsel %vm673_vm14, %v1369_v48, 0.0  ;;  %v761_v31 = vmul.f32 %v720_v19, %v720_v19  ;;  %v747_v2 = vld [vmem:[%s1270_s17] sm:$0xff] }
 0x1a3   : > { %v771_v14 = vadd.f32 %v770_v10, %v756_v4  ;;  %v722_v33 = vsel %vm674_vm15, %v1371_v50, 0.0  ;;  %v762_v37 = vmul.f32 %v721_v27, %v721_v27 }
 0x1a4   : > { %v733_v12 = vadd.f32 %v732_v7, %v717_v6  ;;  %v763_v43 = vmul.f32 %v722_v33, %v722_v33 }
 0x1a5   : > { %v772_v18 = vadd.f32 %v771_v14, %v757_v9 }
 0x1a6   : > { %v734_v16 = vadd.f32 %v733_v12, %v718_v11 }
 0x1a7   : > { %v773_v25 = vadd.f32 %v772_v18, %v758_v13 }
 0x1a8   : > { %v735_v21 = vadd.f32 %v734_v16, %v719_v15 }
 0x1a9   : > { %v774_v54 = vadd.f32 %v773_v25, %v759_v17 }
 0x1aa   : > { %v736_v29 = vadd.f32 %v735_v21, %v720_v19 }
 0x1ab   : > { %v775_v39 = vadd.f32 %v774_v54, %v760_v23 }
 0x1ac   : > { %v737_v35 = vadd.f32 %v736_v29, %v721_v27 }
 0x1ad   : > { %v776_v45 = vadd.f32 %v775_v39, %v761_v31 }
 0x1ae   : > { %v738_v41 = vadd.f32 %v737_v35, %v722_v33 }
 0x1af   : > { %v777_v49 = vadd.f32 %v776_v45, %v762_v37 }
 0x1b0   : > { %v739_v47 = vrot.slane %v738_v41, 4 }
 0x1b1   : > { %v778_v53 = vadd.f32 %v777_v49, %v763_v43 }
 0x1b2   : > { %v740_v51 = vadd.f32 %v739_v47, %v738_v41 }
 0x1b3   : > { %v779_v56 = vrot.slane %v778_v53, 4 }
 0x1b4   : > { %v741_v55 = vrot.slane %v740_v51, 2 }
 0x1b5   : > { %v780_v58 = vadd.f32 %v779_v56, %v778_v53 }
 0x1b6   : > { %v742_v57 = vadd.f32 %v741_v55, %v740_v51 }
 0x1b7   : > { %v781_v61 = vrot.slane %v780_v58, 2 }
 0x1b8   : > { %v743_v59 = vrot.slane %v742_v57, 1 }
 0x1b9   : > { %v782_v63 = vadd.f32 %v781_v61, %v780_v58 }
 0x1ba   : > { %v744_v62 = vadd.f32 %v743_v59, %v742_v57 }
 0x1bb   : > { %v783_v1 = vrot.slane %v782_v63, 1 }
 0x1bc   : > { %v745_v0 = vadd.f32 %v744_v62, %v723_v60 }
 0x1bd   : > { %v784_v3 = vadd.f32 %v783_v1, %v782_v63 }
 0x1be   : > { %746 = vst [vmem:[%s1260_s11] sm:$0xff] %v745_v0 }
 0x1bf   : > { %v785_v4 = vadd.f32 %v784_v3, %v747_v2 }
 0x1c1   : > { %786 = vst [vmem:[%s1270_s17] sm:$0xff] %v785_v4 }
 0x1c2 PF: > { %p1062_p9 = scmp.gt.s32.totalorder %s1336_s21, 300 }
 0x1c4   : > { %790 = sbr.rel (%p1062_p9) target bundleno = 504 (0x1f8), region = 52 }
 0x1c9   : > { %v792_v5 = vadd.f32 %v1343_v22, %v1341_v20  ;;  %v816_v6 = vmul.f32 %v1341_v20, %v1341_v20  ;;  %v817_v7 = vmul.f32 %v1343_v22, %v1343_v22  ;;  %v818_v9 = vmul.f32 %v1347_v26, %v1347_v26  ;;  %v791_v60 = vld [vmem:[%s1260_s11] sm:$0xff] }
 0x1ca   : > { %v819_v11 = vmul.f32 %v1351_v30, %v1351_v30  ;;  %v820_v13 = vmul.f32 %v1355_v34, %v1355_v34  ;;  %v821_v22 = vmul.f32 %v1359_v38, %v1359_v38  ;;  %v822_v16 = vmul.f32 %v1363_v42, %v1363_v42 }
 0x1cb   : > { %v793_v8 = vadd.f32 %v792_v5, %v1347_v26  ;;  %v832_v12 = vadd.f32 %v817_v7, %v816_v6  ;;  %v823_v18 = vmul.f32 %v1367_v46, %v1367_v46  ;;  %v824_v21 = vmul.f32 %v1345_v24, %v1345_v24 }
 0x1cc   : > { %v825_v25 = vmul.f32 %v1349_v28, %v1349_v28  ;;  %v826_v29 = vmul.f32 %v1353_v32, %v1353_v32  ;;  %v827_v54 = vmul.f32 %v1357_v36, %v1357_v36  ;;  %v828_v35 = vmul.f32 %v1361_v40, %v1361_v40 }
 0x1cd   : > { %v794_v10 = vadd.f32 %v793_v8, %v1351_v30  ;;  %v833_v20 = vadd.f32 %v832_v12, %v818_v9  ;;  %v829_v39 = vmul.f32 %v1365_v44, %v1365_v44  ;;  %v830_v43 = vmul.f32 %v1369_v48, %v1369_v48 }
 0x1ce   : > { %v831_v47 = vmul.f32 %v1371_v50, %v1371_v50 }
 0x1cf   : > { %v795_v52 = vadd.f32 %v794_v10, %v1355_v34  ;;  %v834_v15 = vadd.f32 %v833_v20, %v819_v11 }
 0x1d1   : > { %v796_v14 = vadd.f32 %v795_v52, %v1359_v38  ;;  %v835_v17 = vadd.f32 %v834_v15, %v820_v13 }
 0x1d3   : > { %v797_v26 = vadd.f32 %v796_v14, %v1363_v42  ;;  %v836_v19 = vadd.f32 %v835_v17, %v821_v22 }
 0x1d5   : > { %v798_v30 = vadd.f32 %v797_v26, %v1367_v46  ;;  %v837_v23 = vadd.f32 %v836_v19, %v822_v16 }
 0x1d7   : > { %v799_v34 = vadd.f32 %v798_v30, %v1345_v24  ;;  %v838_v27 = vadd.f32 %v837_v23, %v823_v18 }
 0x1d9   : > { %v800_v38 = vadd.f32 %v799_v34, %v1349_v28  ;;  %v839_v31 = vadd.f32 %v838_v27, %v824_v21 }
 0x1db   : > { %v801_v42 = vadd.f32 %v800_v38, %v1353_v32  ;;  %v840_v33 = vadd.f32 %v839_v31, %v825_v25 }
 0x1dd   : > { %v802_v46 = vadd.f32 %v801_v42, %v1357_v36  ;;  %v841_v37 = vadd.f32 %v840_v33, %v826_v29 }
 0x1df   : > { %v803_v24 = vadd.f32 %v802_v46, %v1361_v40  ;;  %v842_v41 = vadd.f32 %v841_v37, %v827_v54 }
 0x1e1   : > { %v804_v28 = vadd.f32 %v803_v24, %v1365_v44  ;;  %v843_v36 = vadd.f32 %v842_v41, %v828_v35 }
 0x1e3   : > { %v805_v32 = vadd.f32 %v804_v28, %v1369_v48  ;;  %v844_v40 = vadd.f32 %v843_v36, %v829_v39 }
 0x1e5   : > { %v806_v45 = vadd.f32 %v805_v32, %v1371_v50  ;;  %v845_v51 = vadd.f32 %v844_v40, %v830_v43  ;;  %v815_v50 = vld [vmem:[%s1270_s17] sm:$0xff] }
 0x1e7   : > { %v807_v49 = vrot.slane %v806_v45, 4  ;;  %v846_v44 = vadd.f32 %v845_v51, %v831_v47 }
 0x1e9   : > { %v808_v53 = vadd.f32 %v807_v49, %v806_v45  ;;  %v847_v56 = vrot.slane %v846_v44, 4 }
 0x1eb   : > { %v809_v55 = vrot.slane %v808_v53, 2  ;;  %v848_v58 = vadd.f32 %v847_v56, %v846_v44 }
 0x1ed   : > { %v810_v57 = vadd.f32 %v809_v55, %v808_v53  ;;  %v849_v48 = vrot.slane %v848_v58, 2 }
 0x1ef   : > { %v811_v59 = vrot.slane %v810_v57, 1  ;;  %v850_v62 = vadd.f32 %v849_v48, %v848_v58 }
 0x1f1   : > { %v812_v61 = vadd.f32 %v811_v59, %v810_v57  ;;  %v851_v0 = vrot.slane %v850_v62, 1 }
 0x1f3   : > { %v813_v63 = vadd.f32 %v812_v61, %v791_v60  ;;  %v852_v1 = vadd.f32 %v851_v0, %v850_v62 }
 0x1f5   : > { %814 = vst [vmem:[%s1260_s11] sm:$0xff] %v813_v63  ;;  %v853_v2 = vadd.f32 %v852_v1, %v815_v50 }
 0x1f7   : > { %854 = vst [vmem:[%s1270_s17] sm:$0xff] %v853_v2 }
 0x1f8 PF: > { %s17_s25 = sadd.s32 1, %s1186_s25   ;;  %s1507_s21 = smov %s1178_s23 }
 0x1f9   : > { %p14_p10 = scmp.ge.s32.totalorder %s17_s25, 6   ;;  %s1508_s22 = smov %s1182_s24 }
 0x1fa   : > { %s1509_s23 = smov %s1512_s26  ;;  %s1510_s24 = smov %s1516_s27 }
 0x1fb   :  { %16 = sbr.rel (!%p14_p10) target bundleno = 3 (0x3), region = 94 }

// kernel: _forward_impl.3
= control target key start
LH: loop header
LB: loop body
LE: loop exit
PB: predicated region body
PF: predicated region fallthrough
CT: control target
= control target key end

     0   :  { %s1002_s15 = smov 0   ;;  %s1004_s16 = smov 0   ;;  %s1251_s0 = inlined_call_operand.vmem [shape: bf16[512,128], index: 0, kind: input, shape index: {}]   ;;  %s1252_s1 = inlined_call_operand.vmem [shape: bf16[128,128], index: 1, kind: input, shape index: {}]   ;;  %s1253_s2 = inlined_call_operand.vmem [shape: f32[1,128], index: 2, kind: input, shape index: {}]   ;;  %s1254_s3 = inlined_call_operand.vmem [shape: f32[16,128], index: 3, kind: output, shape index: {0}]   ;;  %s1255_s4 = inlined_call_operand.vmem [shape: f32[16,128], index: 4, kind: output, shape index: {1}]  }
   0x1   :  { %s1006_s17 = smov 0   ;;  %s1008_s18 = smov 0  }
   0x2   :  { %s1010_s19 = smov 0  }
   0x3 LB: > { %s24_s20 = sadd.s32 1, %s966_s17  ;;  %s27_s21 = sadd.s32 1, %s970_s18  ;;  %s974_s19 = sphi %s1010_s19, %s15_s19   ;;  %s970_s18 = sphi %s1008_s18, %s1259_s18   ;;  %s966_s17 = sphi %s1006_s17, %s1258_s17   ;;  %s962_s16 = sphi %s1004_s16, %s1257_s16   ;;  %s958_s15 = sphi %s1002_s15, %s1256_s15  }
   0x4   : > { %p25_p0 = scmp.ge.s32.totalorder %s24_s20, 2  ;;  %p777_p1 = scmp.ge.s32.totalorder %s974_s19, 1 }
   0x5   : > { %p186_p2 = scmp.lt.s32.totalorder %s974_s19, 5 }
   0x6   : > { %s1261_s20 = smov (%p25_p0, %s24_s20), 0  ;;  %s1263_s21 = smov (!%p25_p0, %s27_s21), %s970_s18 }
   0x7   : > { %p187_p3 = pnand %p777_p1, %p186_p2  ;;  %p29_p4 = scmp.ge.s32.totalorder %s1263_s21, 2 }
   0x8   : > { %s778_s22 = sshll.u32 (!%p187_p3), %s962_s16, 1  ;;  %p227_p5 = scmp.lt.s32.totalorder (!%p187_p3), %s962_s16, 1 }
   0x9   : > { %s1265_s21 = smov (%p29_p4, %s1263_s21), 0  ;;  %190 = sbr.rel (%p187_p3) target bundleno = 329 (0x149), region = 32 }
   0xa   : > { %s1032_s23 = sadd.s32 (!%p187_p3), %s958_s15, %s778_s22  ;;  %p783_p7 = scmp.ne.s32.totalorder (!%p187_p3), %s958_s15, 0 }
   0xb   : > { %s779_s24 = sshll.u32 (!%p187_p3), %s1032_s23, 4 }
   0xc   : > { %p220_p6 = scmp.lt.s32.totalorder (!%p187_p3), %s779_s24, 63 }
   0xe   : > { %s1267_s16 = smov (!%p227_p5, %s962_s16), 1  ;;  %s1269_s24 = smov (!%p220_p6, %s779_s24), 63 }
   0xf   : > { %s781_s25 = sshll.u32 %s1267_s16, 3  ;;  %s780_s26 = sshll.u32 %s1269_s24, 2 }
  0x10   : > { %s1038_s29 = scalar_lea.vmem %s1254_s3, %s781_s25  ;;  %s1043_s6 = scalar_lea.vmem %s1251_s0, %s780_s26 }
  0x11   : > { %s1048_s9 = scalar_lea.vmem %s1255_s4, %s781_s25  ;;  %238 = sbr.rel (%p783_p7) target bundleno = 25 (0x19), region = 36 }
  0x16   : > { %v976_v0 = vmov 0.0  }
  0x17   : > { %239 = vst [vmem:[%s1038_s29] sm:$0xff] %v976_v0 }
  0x18   : > { %240 = vst [vmem:[%s1048_s9] sm:$0xff] %v976_v0 }
  0x19 PF: > { %v869_v1 = vld [vmem:[%s1252_s1 + $0x38] sm:$0xff]  ;;  %v868_v2 = vld [vmem:[%s1252_s1 + $0x30] sm:$0xff]  ;;  %v867_v3 = vld [vmem:[%s1252_s1 + $0x28] sm:$0xff]  ;;  %s849_s8 = sshll.u32 %s1032_s23, 7 }
  0x1a   : > { %373 = vmatpush.bf16.msra.mxu0 %v869_v1  ;;  %870 = vmatpush.bf16.msra.mxu1 %v869_v1  ;;  %v866_v4 = vld [vmem:[%s1252_s1 + $0x20] sm:$0xff]  ;;  %v865_v5 = vld [vmem:[%s1252_s1 + $0x18] sm:$0xff]  ;;  %v864_v6 = vld [vmem:[%s1252_s1 + $0x10] sm:$0xff]  ;;  %s1087_s10 = sadd.s32 128, %s849_s8 }
  0x1b   : > { %871 = vmatpush.bf16.msra.mxu2 %v869_v1  ;;  %872 = vmatpush.bf16.msra.mxu3 %v869_v1  ;;  %v863_v7 = vld [vmem:[%s1252_s1 + $0x8] sm:$0xff]  ;;  %v862_v8 = vld [vmem:[%s1252_s1] sm:$0xff]  ;;  %v856_v10 = vld [vmem:[%s1043_s6 + $0x10] sm:$0xff]  ;;  %p850_p8 = scmp.le.s32.totalorder %s1087_s10, 300 }
  0x1c   : > { %v854_v9 = vld [vmem:[%s1043_s6] sm:$0xff]  ;;  %v860_v12 = vld [vmem:[%s1043_s6 + $0x30] sm:$0xff]  ;;  %v855_v13 = vld [vmem:[%s1043_s6 + $0x8] sm:$0xff] }
  0x1d   : > { %v858_v11 = vld [vmem:[%s1043_s6 + $0x20] sm:$0xff]  ;;  %v857_v14 = vld [vmem:[%s1043_s6 + $0x18] sm:$0xff]  ;;  %v859_v15 = vld [vmem:[%s1043_s6 + $0x28] sm:$0xff] }
  0x1e   : > { %374 = vmatpush.bf16.msra.mxu0 %v868_v2  ;;  %873 = vmatpush.bf16.msra.mxu1 %v868_v2  ;;  %v861_v16 = vld [vmem:[%s1043_s6 + $0x38] sm:$0xff]  ;;  %v935_v17 = vld [vmem:[%s1253_s2] ss:$0 sm:$0xff] }
  0x1f   : > { %874 = vmatpush.bf16.msra.mxu2 %v868_v2  ;;  %875 = vmatpush.bf16.msra.mxu3 %v868_v2 }
  0x22   : > { %375 = vmatpush.bf16.msra.mxu0 %v867_v3  ;;  %876 = vmatpush.bf16.msra.mxu1 %v867_v3 }
  0x23   : > { %877 = vmatpush.bf16.msra.mxu2 %v867_v3  ;;  %878 = vmatpush.bf16.msra.mxu3 %v867_v3 }
  0x26   : > { %376 = vmatpush.bf16.msra.mxu0 %v866_v4  ;;  %879 = vmatpush.bf16.msra.mxu1 %v866_v4 }
  0x27   : > { %880 = vmatpush.bf16.msra.mxu2 %v866_v4  ;;  %881 = vmatpush.bf16.msra.mxu3 %v866_v4 }
  0x2a   : > { %377 = vmatpush.bf16.msra.mxu0 %v865_v5  ;;  %882 = vmatpush.bf16.msra.mxu1 %v865_v5 }
  0x2b   : > { %883 = vmatpush.bf16.msra.mxu2 %v865_v5  ;;  %884 = vmatpush.bf16.msra.mxu3 %v865_v5 }
  0x2e   : > { %378 = vmatpush.bf16.msra.mxu0 %v864_v6  ;;  %885 = vmatpush.bf16.msra.mxu1 %v864_v6 }
  0x2f   : > { %886 = vmatpush.bf16.msra.mxu2 %v864_v6  ;;  %887 = vmatpush.bf16.msra.mxu3 %v864_v6 }
  0x32   : > { %379 = vmatpush.bf16.msra.mxu0 %v863_v7  ;;  %888 = vmatpush.bf16.msra.mxu1 %v863_v7 }
  0x33   : > { %889 = vmatpush.bf16.msra.mxu2 %v863_v7  ;;  %890 = vmatpush.bf16.msra.mxu3 %v863_v7 }
  0x36   : > { %380 = vmatpush.bf16.msra.mxu0 %v862_v8  ;;  %891 = vmatpush.bf16.msra.mxu1 %v862_v8 }
  0x37   : > { %892 = vmatpush.bf16.msra.mxu2 %v862_v8  ;;  %893 = vmatpush.bf16.msra.mxu3 %v862_v8 }
  0x39   : > { %381 = vmatmul.bf16.vlgmr.msra.gmra.mxu0 %v854_v9  ;;  %391 = vmatmul.bf16.vlgmr.msra.gmra.mxu1 %v856_v10 }
  0x3a   : > { %401 = vmatmul.bf16.vlgmr.msra.gmra.mxu2 %v858_v11  ;;  %411 = vmatmul.bf16.vlgmr.msra.gmra.mxu3 %v860_v12 }
  0x49   : > { %386 = vmatmul.bf16.gmra.mxu0 %v855_v13  ;;  %396 = vmatmul.bf16.gmra.mxu1 %v857_v14 }
  0x4a   : > { %406 = vmatmul.bf16.gmra.mxu2 %v859_v15  ;;  %416 = vmatmul.bf16.gmra.mxu3 %v861_v16 }
  0xb6   : > { %v382_v18 = vpop.f32.mrf.mxu0  ;;  %v392_v19 = vpop.f32.mrf.mxu1 }
  0xb7   : > { %v383_v20 = vadd.f32 %v935_v17, %v382_v18  ;;  %v393_v21 = vadd.f32 %v935_v17, %v392_v19 }
  0xb9   : > { %v1092_v22 = vmax.f32 %v383_v20, 0.0  ;;  %v1094_v23 = vmax.f32 %v393_v21, 0.0 }
  0xbd   : > { %v402_v24 = vpop.f32.mrf.mxu2  ;;  %v412_v25 = vpop.f32.mrf.mxu3 }
  0xbe   : > { %v403_v26 = vadd.f32 %v935_v17, %v402_v24  ;;  %v413_v27 = vadd.f32 %v935_v17, %v412_v25  ;;  %v384_v28 = vpop.f32.mrf.mxu0  ;;  %v394_v29 = vpop.f32.mrf.mxu1 }
  0xbf   : > { %v385_v30 = vadd.f32 %v935_v17, %v384_v28  ;;  %v395_v31 = vadd.f32 %v935_v17, %v394_v29 }
  0xc0   : > { %v1096_v32 = vmax.f32 %v403_v26, 0.0  ;;  %v1098_v33 = vmax.f32 %v413_v27, 0.0 }
  0xc1   : > { %v1100_v34 = vmax.f32 %v385_v30, 0.0  ;;  %v1102_v35 = vmax.f32 %v395_v31, 0.0 }
  0xc5   : > { %v404_v36 = vpop.f32.mrf.mxu2  ;;  %v414_v37 = vpop.f32.mrf.mxu3 }
  0xc6   : > { %v405_v38 = vadd.f32 %v935_v17, %v404_v36  ;;  %v415_v39 = vadd.f32 %v935_v17, %v414_v37  ;;  %v387_v40 = vpop.f32.mrf.mxu0  ;;  %v397_v41 = vpop.f32.mrf.mxu1 }
  0xc7   : > { %v388_v42 = vadd.f32 %v935_v17, %v387_v40  ;;  %v398_v43 = vadd.f32 %v935_v17, %v397_v41 }
  0xc8   : > { %v1104_v44 = vmax.f32 %v405_v38, 0.0  ;;  %v1106_v45 = vmax.f32 %v415_v39, 0.0 }
  0xc9   : > { %v1108_v46 = vmax.f32 %v388_v42, 0.0  ;;  %v1110_v47 = vmax.f32 %v398_v43, 0.0 }
  0xcd   : > { %v407_v48 = vpop.f32.mrf.mxu2  ;;  %v417_v49 = vpop.f32.mrf.mxu3 }
  0xce   : > { %v408_v50 = vadd.f32 %v935_v17, %v407_v48  ;;  %v418_v51 = vadd.f32 %v935_v17, %v417_v49  ;;  %v389_v52 = vpop.f32.mrf.mxu0  ;;  %v399_v53 = vpop.f32.mrf.mxu1 }
  0xcf   : > { %v390_v54 = vadd.f32 %v935_v17, %v389_v52  ;;  %v400_v55 = vadd.f32 %v935_v17, %v399_v53 }
  0xd0   : > { %v1112_v56 = vmax.f32 %v408_v50, 0.0  ;;  %v1114_v57 = vmax.f32 %v418_v51, 0.0 }
  0xd1   : > { %v1116_v58 = vmax.f32 %v390_v54, 0.0  ;;  %v1118_v59 = vmax.f32 %v400_v55, 0.0 }
  0xd4   : > { %445 = sbr.rel (%p850_p8) target bundleno = 275 (0x113), region = 40 }
  0xd5   : > { %v409_v60 = vpop.f32.mrf.mxu2  ;;  %v419_v61 = vpop.f32.mrf.mxu3 }
  0xd6   : > { %v410_v62 = vadd.f32 %v935_v17, %v409_v60  ;;  %v420_v63 = vadd.f32 %v935_v17, %v419_v61 }
  0xd8   : > { %v1120_v0 = vmax.f32 %v410_v62, 0.0  ;;  %v1122_v1 = vmax.f32 %v420_v63, 0.0 }
  0xd9   : > { %v446_v2 = vlaneseq  ;;  %v1130_v5 = vstv %s849_s8 }
  0xdb   : > { %v1125_v3 = vshrl.u32 %v446_v2, 7 }
  0xdd   : > { %v448_v4 = vadd.s32 8, %v1125_v3  ;;  %v449_v6 = vadd.s32 16, %v1125_v3  ;;  %v450_v7 = vadd.s32 24, %v1125_v3  ;;  %v464_v8 = vadd.s32 %v1130_v5, %v1125_v3 }
  0xde   : > { %v451_v10 = vadd.s32 32, %v1125_v3  ;;  %v452_v12 = vadd.s32 40, %v1125_v3  ;;  %v453_v14 = vadd.s32 48, %v1125_v3  ;;  %v454_v18 = vadd.s32 56, %v1125_v3 }
  0xdf   : > { %v465_v9 = vadd.s32 %v1130_v5, %v448_v4  ;;  %v466_v11 = vadd.s32 %v1130_v5, %v449_v6  ;;  %v467_v13 = vadd.s32 %v1130_v5, %v450_v7  ;;  %vm480_vm0 = vcmp.lt.s32.totalorder %v464_v8, 300 }
  0xe0   : > { %v468_v15 = vadd.s32 %v1130_v5, %v451_v10  ;;  %v528_v16 = vsel %vm480_vm0, %v1092_v22, 0.0  ;;  %v469_v19 = vadd.s32 %v1130_v5, %v452_v12  ;;  %v455_v20 = vadd.s32 64, %v1125_v3 }
  0xe1   : > { %vm481_vm1 = vcmp.lt.s32.totalorder %v465_v9, 300  ;;  %vm482_vm2 = vcmp.lt.s32.totalorder %v466_v11, 300  ;;  %vm483_vm3 = vcmp.lt.s32.totalorder %v467_v13, 300  ;;  %v470_v25 = vadd.s32 %v1130_v5, %v453_v14 }
  0xe2   : > { %v529_v17 = vsel %vm481_vm1, %v1100_v34, 0.0  ;;  %v530_v21 = vsel %vm482_vm2, %v1108_v46, 0.0  ;;  %vm484_vm4 = vcmp.lt.s32.totalorder %v468_v15, 300  ;;  %v569_v26 = vmul.f32 %v528_v16, %v528_v16 }
  0xe3   : > { %v545_v24 = vadd.f32 %v529_v17, %v528_v16  ;;  %v570_v27 = vmul.f32 %v529_v17, %v529_v17  ;;  %v531_v28 = vsel %vm483_vm3, %v1116_v58, 0.0  ;;  %v456_v30 = vadd.s32 72, %v1125_v3 }
  0xe4   : > { %v471_v31 = vadd.s32 %v1130_v5, %v454_v18  ;;  %vm485_vm5 = vcmp.lt.s32.totalorder %v469_v19, 300  ;;  %v571_v36 = vmul.f32 %v530_v21, %v530_v21  ;;  %v457_v37 = vadd.s32 80, %v1125_v3 }
  0xe5   : > { %v546_v29 = vadd.f32 %v545_v24, %v530_v21  ;;  %v532_v38 = vsel %vm484_vm4, %v1094_v23, 0.0  ;;  %v472_v40 = vadd.s32 %v1130_v5, %v455_v20  ;;  %vm486_vm6 = vcmp.lt.s32.totalorder %v470_v25, 300 }
  0xe6   : > { %v572_v41 = vmul.f32 %v531_v28, %v531_v28  ;;  %v585_v42 = vadd.f32 %v570_v27, %v569_v26  ;;  %v458_v43 = vadd.s32 88, %v1125_v3  ;;  %v533_v48 = vsel %vm485_vm5, %v1102_v35, 0.0 }
  0xe7   : > { %v547_v39 = vadd.f32 %v546_v29, %v531_v28  ;;  %v473_v50 = vadd.s32 %v1130_v5, %v456_v30  ;;  %vm487_vm7 = vcmp.lt.s32.totalorder %v471_v31, 300  ;;  %v573_v51 = vmul.f32 %v532_v38, %v532_v38 }
  0xe8   : > { %v586_v52 = vadd.f32 %v585_v42, %v571_v36  ;;  %v459_v53 = vadd.s32 96, %v1125_v3  ;;  %v534_v54 = vsel %vm486_vm6, %v1110_v47, 0.0  ;;  %v474_v60 = vadd.s32 %v1130_v5, %v457_v37 }
  0xe9   : > { %v548_v49 = vadd.f32 %v547_v39, %v532_v38  ;;  %vm488_vm8 = vcmp.lt.s32.totalorder %v472_v40, 300  ;;  %v574_v61 = vmul.f32 %v533_v48, %v533_v48  ;;  %v460_v63 = vadd.s32 104, %v1125_v3 }
  0xea   : > { %v587_v62 = vadd.f32 %v586_v52, %v572_v41  ;;  %v535_v2 = vsel %vm487_vm7, %v1118_v59, 0.0  ;;  %v475_v6 = vadd.s32 %v1130_v5, %v458_v43  ;;  %vm489_vm9 = vcmp.lt.s32.totalorder %v473_v50, 300 }
  0xeb   : > { %v549_v55 = vadd.f32 %v548_v49, %v533_v48  ;;  %v575_v7 = vmul.f32 %v534_v54, %v534_v54  ;;  %v461_v9 = vadd.s32 112, %v1125_v3  ;;  %v536_v10 = vsel %vm488_vm8, %v1096_v32, 0.0 }
  0xec   : > { %v588_v8 = vadd.f32 %v587_v62, %v573_v51  ;;  %v476_v12 = vadd.s32 %v1130_v5, %v459_v53  ;;  %vm490_vm10 = vcmp.lt.s32.totalorder %v474_v60, 300  ;;  %v576_v13 = vmul.f32 %v535_v2, %v535_v2 }
  0xed   : > { %v550_v4 = vadd.f32 %v549_v55, %v534_v54  ;;  %v462_v15 = vadd.s32 120, %v1125_v3  ;;  %v537_v16 = vsel %vm489_vm9, %v1104_v44, 0.0  ;;  %v477_v18 = vadd.s32 %v1130_v5, %v460_v63 }
  0xee   : > { %v589_v14 = vadd.f32 %v588_v8, %v574_v61  ;;  %vm491_vm11 = vcmp.lt.s32.totalorder %v475_v6, 300  ;;  %v577_v19 = vmul.f32 %v536_v10, %v536_v10  ;;  %v538_v21 = vsel %vm490_vm10, %v1112_v56, 0.0 }
  0xef   : > { %v551_v11 = vadd.f32 %v550_v4, %v535_v2  ;;  %v478_v25 = vadd.s32 %v1130_v5, %v461_v9  ;;  %vm492_vm12 = vcmp.lt.s32.totalorder %v476_v12, 300  ;;  %v578_v26 = vmul.f32 %v537_v16, %v537_v16 }
  0xf0   : > { %v590_v20 = vadd.f32 %v589_v14, %v575_v7  ;;  %v539_v28 = vsel %vm491_vm11, %v1120_v0, 0.0  ;;  %v479_v3 = vadd.s32 %v1130_v5, %v462_v15  ;;  %vm493_vm13 = vcmp.lt.s32.totalorder %v477_v18, 300 }
  0xf1   : > { %v552_v17 = vadd.f32 %v551_v11, %v536_v10  ;;  %v579_v30 = vmul.f32 %v538_v21, %v538_v21  ;;  %v540_v36 = vsel %vm492_vm12, %v1098_v33, 0.0  ;;  %vm494_vm14 = vcmp.lt.s32.totalorder %v478_v25, 300  ;;  %v544_v11 = vld [vmem:[%s1038_s29] sm:$0xff] }
  0xf2   : > { %v591_v27 = vadd.f32 %v590_v20, %v576_v13  ;;  %v580_v38 = vmul.f32 %v539_v28, %v539_v28  ;;  %v541_v40 = vsel %vm493_vm13, %v1106_v45, 0.0  ;;  %vm495_vm15 = vcmp.lt.s32.totalorder %v479_v3, 300 }
  0xf3   : > { %v553_v24 = vadd.f32 %v552_v17, %v537_v16  ;;  %v581_v42 = vmul.f32 %v540_v36, %v540_v36  ;;  %v542_v48 = vsel %vm494_vm14, %v1114_v57, 0.0  ;;  %v582_v50 = vmul.f32 %v541_v40, %v541_v40  ;;  %v568_v17 = vld [vmem:[%s1048_s9] sm:$0xff] }
  0xf4   : > { %v592_v31 = vadd.f32 %v591_v27, %v577_v19  ;;  %v543_v51 = vsel %vm495_vm15, %v1122_v1, 0.0  ;;  %v583_v53 = vmul.f32 %v542_v48, %v542_v48 }
  0xf5   : > { %v554_v29 = vadd.f32 %v553_v24, %v538_v21  ;;  %v584_v60 = vmul.f32 %v543_v51, %v543_v51 }
  0xf6   : > { %v593_v39 = vadd.f32 %v592_v31, %v578_v26 }
  0xf7   : > { %v555_v37 = vadd.f32 %v554_v29, %v539_v28 }
  0xf8   : > { %v594_v43 = vadd.f32 %v593_v39, %v579_v30 }
  0xf9   : > { %v556_v41 = vadd.f32 %v555_v37, %v540_v36 }
  0xfa   : > { %v595_v5 = vadd.f32 %v594_v43, %v580_v38 }
  0xfb   : > { %v557_v49 = vadd.f32 %v556_v41, %v541_v40 }
  0xfc   : > { %v596_v54 = vadd.f32 %v595_v5, %v581_v42 }
  0xfd   : > { %v558_v52 = vadd.f32 %v557_v49, %v542_v48 }
  0xfe   : > { %v597_v61 = vadd.f32 %v596_v54, %v582_v50 }
  0xff   : > { %v559_v55 = vadd.f32 %v558_v52, %v543_v51 }
 0x100   : > { %v598_v63 = vadd.f32 %v597_v61, %v583_v53 }
 0x101   : > { %v560_v62 = vrot.slane %v559_v55, 4 }
 0x102   : > { %v599_v4 = vadd.f32 %v598_v63, %v584_v60 }
 0x103   : > { %v561_v2 = vadd.f32 %v560_v62, %v559_v55 }
 0x104   : > { %v600_v7 = vrot.slane %v599_v4, 4 }
 0x105   : > { %v562_v6 = vrot.slane %v561_v2, 2 }
 0x106   : > { %v601_v9 = vadd.f32 %v600_v7, %v599_v4 }
 0x107   : > { %v563_v8 = vadd.f32 %v562_v6, %v561_v2 }
 0x108   : > { %v602_v12 = vrot.slane %v601_v9, 2 }
 0x109   : > { %v564_v10 = vrot.slane %v563_v8, 1 }
 0x10a   : > { %v603_v14 = vadd.f32 %v602_v12, %v601_v9 }
 0x10b   : > { %v565_v13 = vadd.f32 %v564_v10, %v563_v8 }
 0x10c   : > { %v604_v16 = vrot.slane %v603_v14, 1 }
 0x10d   : > { %v566_v15 = vadd.f32 %v565_v13, %v544_v11 }
 0x10e   : > { %v605_v18 = vadd.f32 %v604_v16, %v603_v14 }
 0x10f   : > { %567 = vst [vmem:[%s1038_s29] sm:$0xff] %v566_v15 }
 0x110   : > { %v606_v19 = vadd.f32 %v605_v18, %v568_v17 }
 0x112   : > { %607 = vst [vmem:[%s1048_s9] sm:$0xff] %v606_v19 }
 0x113 PF: > { %p851_p9 = scmp.gt.s32.totalorder %s1087_s10, 300 }
 0x115   : > { %611 = sbr.rel (%p851_p9) target bundleno = 329 (0x149), region = 44 }
 0x11a   : > { %v613_v20 = vadd.f32 %v1100_v34, %v1092_v22  ;;  %v637_v21 = vmul.f32 %v1092_v22, %v1092_v22  ;;  %v638_v24 = vmul.f32 %v1100_v34, %v1100_v34  ;;  %v639_v26 = vmul.f32 %v1108_v46, %v1108_v46  ;;  %v612_v11 = vld [vmem:[%s1038_s29] sm:$0xff] }
 0x11b   : > { %v640_v28 = vmul.f32 %v1116_v58, %v1116_v58  ;;  %v641_v30 = vmul.f32 %v1094_v23, %v1094_v23  ;;  %v642_v34 = vmul.f32 %v1102_v35, %v1102_v35  ;;  %v643_v37 = vmul.f32 %v1110_v47, %v1110_v47 }
 0x11c   : > { %v614_v25 = vadd.f32 %v613_v20, %v1108_v46  ;;  %v653_v29 = vadd.f32 %v638_v24, %v637_v21  ;;  %v644_v39 = vmul.f32 %v1118_v59, %v1118_v59  ;;  %v645_v41 = vmul.f32 %v1096_v32, %v1096_v32 }
 0x11d   : > { %v646_v43 = vmul.f32 %v1104_v44, %v1104_v44  ;;  %v647_v49 = vmul.f32 %v1112_v56, %v1112_v56  ;;  %v648_v5 = vmul.f32 %v1120_v0, %v1120_v0  ;;  %v649_v52 = vmul.f32 %v1098_v33, %v1098_v33 }
 0x11e   : > { %v615_v27 = vadd.f32 %v614_v25, %v1116_v58  ;;  %v654_v22 = vadd.f32 %v653_v29, %v639_v26  ;;  %v650_v54 = vmul.f32 %v1106_v45, %v1106_v45  ;;  %v651_v60 = vmul.f32 %v1114_v57, %v1114_v57 }
 0x11f   : > { %v652_v62 = vmul.f32 %v1122_v1, %v1122_v1 }
 0x120   : > { %v616_v3 = vadd.f32 %v615_v27, %v1094_v23  ;;  %v655_v36 = vadd.f32 %v654_v22, %v640_v28 }
 0x122   : > { %v617_v31 = vadd.f32 %v616_v3, %v1102_v35  ;;  %v656_v38 = vadd.f32 %v655_v36, %v641_v30 }
 0x124   : > { %v618_v46 = vadd.f32 %v617_v31, %v1110_v47  ;;  %v657_v40 = vadd.f32 %v656_v38, %v642_v34 }
 0x126   : > { %v619_v58 = vadd.f32 %v618_v46, %v1118_v59  ;;  %v658_v42 = vadd.f32 %v657_v40, %v643_v37 }
 0x128   : > { %v620_v23 = vadd.f32 %v619_v58, %v1096_v32  ;;  %v659_v48 = vadd.f32 %v658_v42, %v644_v39 }
 0x12a   : > { %v621_v35 = vadd.f32 %v620_v23, %v1104_v44  ;;  %v660_v50 = vadd.f32 %v659_v48, %v645_v41 }
 0x12c   : > { %v622_v47 = vadd.f32 %v621_v35, %v1112_v56  ;;  %v661_v51 = vadd.f32 %v660_v50, %v646_v43 }
 0x12e   : > { %v623_v59 = vadd.f32 %v622_v47, %v1120_v0  ;;  %v662_v53 = vadd.f32 %v661_v51, %v647_v49 }
 0x130   : > { %v624_v32 = vadd.f32 %v623_v59, %v1098_v33  ;;  %v663_v55 = vadd.f32 %v662_v53, %v648_v5 }
 0x132   : > { %v625_v44 = vadd.f32 %v624_v32, %v1106_v45  ;;  %v664_v0 = vadd.f32 %v663_v55, %v649_v52 }
 0x134   : > { %v626_v56 = vadd.f32 %v625_v44, %v1114_v57  ;;  %v665_v33 = vadd.f32 %v664_v0, %v650_v54 }
 0x136   : > { %v627_v61 = vadd.f32 %v626_v56, %v1122_v1  ;;  %v666_v2 = vadd.f32 %v665_v33, %v651_v60  ;;  %v636_v1 = vld [vmem:[%s1048_s9] sm:$0xff] }
 0x138   : > { %v628_v63 = vrot.slane %v627_v61, 4  ;;  %v667_v45 = vadd.f32 %v666_v2, %v652_v62 }
 0x13a   : > { %v629_v4 = vadd.f32 %v628_v63, %v627_v61  ;;  %v668_v7 = vrot.slane %v667_v45, 4 }
 0x13c   : > { %v630_v6 = vrot.slane %v629_v4, 2  ;;  %v669_v9 = vadd.f32 %v668_v7, %v667_v45 }
 0x13e   : > { %v631_v8 = vadd.f32 %v630_v6, %v629_v4  ;;  %v670_v57 = vrot.slane %v669_v9, 2 }
 0x140   : > { %v632_v10 = vrot.slane %v631_v8, 1  ;;  %v671_v13 = vadd.f32 %v670_v57, %v669_v9 }
 0x142   : > { %v633_v12 = vadd.f32 %v632_v10, %v631_v8  ;;  %v672_v15 = vrot.slane %v671_v13, 1 }
 0x144   : > { %v634_v14 = vadd.f32 %v633_v12, %v612_v11  ;;  %v673_v16 = vadd.f32 %v672_v15, %v671_v13 }
 0x146   : > { %635 = vst [vmem:[%s1038_s29] sm:$0xff] %v634_v14  ;;  %v674_v17 = vadd.f32 %v673_v16, %v636_v1 }
 0x148   : > { %675 = vst [vmem:[%s1048_s9] sm:$0xff] %v674_v17 }
 0x149 PF: > { %s15_s19 = sadd.s32 1, %s974_s19   ;;  %s1256_s15 = smov %s966_s17 }
 0x14a   : > { %p12_p10 = scmp.ge.s32.totalorder %s15_s19, 6   ;;  %s1257_s16 = smov %s970_s18 }
 0x14b   : > { %s1258_s17 = smov %s1261_s20  ;;  %s1259_s18 = smov %s1265_s21 }
 0x14c   :  { %14 = sbr.rel (!%p12_p10) target bundleno = 3 (0x3), region = 86 }

// kernel: _forward_impl.5
= control target key start
LH: loop header
LB: loop body
LE: loop exit
PB: predicated region body
PF: predicated region fallthrough
CT: control target
= control target key end

     0   :  { %s1056_s24 = smov 0   ;;  %s1212_s0 = inlined_call_operand.vmem [shape: bf16[512,128], index: 0, kind: input, shape index: {}]   ;;  %s1213_s1 = inlined_call_operand.vmem [shape: bf16[128,128], index: 1, kind: input, shape index: {}]   ;;  %s1214_s2 = inlined_call_operand.vmem [shape: f32[1,128], index: 2, kind: input, shape index: {}]   ;;  %s1215_s3 = inlined_call_operand.vmem [shape: bf16[128,128], index: 3, kind: input, shape index: {}]   ;;  %s1216_s4 = inlined_call_operand.vmem [shape: f32[1,128], index: 4, kind: input, shape index: {}]   ;;  %s1217_s5 = inlined_call_operand.vmem [shape: bf16[128,20], index: 5, kind: input, shape index: {}]   ;;  %s1218_s6 = inlined_call_operand.vmem [shape: f32[1,20], index: 6, kind: input, shape index: {}]   ;;  %s1219_s7 = inlined_call_operand.vmem [shape: f32[384,20], index: 7, kind: output, shape index: {}]  }
   0x1 LB: > { %s802_s25 = sadd.s32 4294967295, %s1014_s24   ;;  %p806_p0 = scmp.ge.s32.totalorder %s1014_s24, 1  ;;  %s1014_s24 = sphi %s1056_s24, %s17_s24  }
   0x2   : > { %p238_p1 = scmp.lt.s32.totalorder %s1014_s24, 4 }
   0x4   : > { %p239_p2 = pnand %p806_p0, %p238_p1 }
   0x5   : > { %s1076_s11 = sshll.u32 (!%p239_p2), %s802_s25, 4 }
   0x6   : > { %242 = sbr.rel (%p239_p2) target bundleno = 544 (0x220), region = 48  ;;  %p271_p3 = scmp.lt.s32.totalorder (!%p239_p2), %s1076_s11, 63 }
   0x7   : > { %p277_p4 = scmp.lt.s32.totalorder (!%p239_p2), %s1076_s11, 47 }
   0xb   : > { %v956_v0 = vld [vmem:[%s1213_s1 + $0x38] sm:$0xff]  ;;  %v955_v1 = vld [vmem:[%s1213_s1 + $0x30] sm:$0xff]  ;;  %v954_v2 = vld [vmem:[%s1213_s1 + $0x28] sm:$0xff]  ;;  %s272_s16 = scalar_select %p271_p3, %s1076_s11, 63  ;;  %vm729_vm0 = vcmask 162816  }
   0xc   : > { %414 = vmatpush.bf16.msra.mxu0 %v956_v0  ;;  %973 = vmatpush.bf16.msra.mxu3 %v956_v0  ;;  %v953_v3 = vld [vmem:[%s1213_s1 + $0x20] sm:$0xff]  ;;  %v952_v4 = vld [vmem:[%s1213_s1 + $0x18] sm:$0xff]  ;;  %v951_v5 = vld [vmem:[%s1213_s1 + $0x10] sm:$0xff]  ;;  %s1221_s11 = smov (!%p277_p4, %s1076_s11), 47 }
   0xd   : > { %v950_v6 = vld [vmem:[%s1213_s1 + $0x8] sm:$0xff]  ;;  %s808_s19 = sshll.u32 %s272_s16, 2  ;;  %v949_v7 = vld [vmem:[%s1213_s1] sm:$0xff]  ;;  %v964_v14 = vld [vmem:[%s1215_s3 + $0x38] sm:$0xff] }
   0xe   : > { %s274_s25 = scalar_lea.vmem %s1212_s0, %s808_s19  ;;  %555 = vmatpush.bf16.msra.mxu1 %v964_v14  ;;  %v963_v15 = vld [vmem:[%s1215_s3 + $0x30] sm:$0xff]  ;;  %v962_v16 = vld [vmem:[%s1215_s3 + $0x28] sm:$0xff]  ;;  %v961_v17 = vld [vmem:[%s1215_s3 + $0x20] sm:$0xff]  ;;  %s810_s19 = sshll.u32 %s1221_s11, 3 }
   0xf   : > { %v941_v8 = vld [vmem:[%s274_s25] sm:$0xff]  ;;  %v947_v9 = vld [vmem:[%s274_s25 + $0x30] sm:$0xff]  ;;  %v942_v10 = vld [vmem:[%s274_s25 + $0x8] sm:$0xff] }
  0x10   : > { %415 = vmatpush.bf16.msra.mxu0 %v955_v1  ;;  %974 = vmatpush.bf16.msra.mxu3 %v955_v1  ;;  %v948_v11 = vld [vmem:[%s274_s25 + $0x38] sm:$0xff]  ;;  %v943_v12 = vld [vmem:[%s274_s25 + $0x10] sm:$0xff]  ;;  %v945_v18 = vld [vmem:[%s274_s25 + $0x20] sm:$0xff] }
  0x11   : > { %v944_v13 = vld [vmem:[%s274_s25 + $0x18] sm:$0xff]  ;;  %v946_v19 = vld [vmem:[%s274_s25 + $0x28] sm:$0xff]  ;;  %v959_v21 = vld [vmem:[%s1215_s3 + $0x10] sm:$0xff]  ;;  %s1175_s25 = scalar_lea.vmem %s1219_s7, %s810_s19 }
  0x12   : > { %556 = vmatpush.bf16.msra.mxu1 %v963_v15  ;;  %v960_v20 = vld [vmem:[%s1215_s3 + $0x18] sm:$0xff]  ;;  %v958_v22 = vld [vmem:[%s1215_s3 + $0x8] sm:$0xff]  ;;  %v957_v23 = vld [vmem:[%s1215_s3] sm:$0xff] }
  0x13   : > { %v1122_v25 = vld [vmem:[%s1214_s2] ss:$0 sm:$0xff] }
  0x14   : > { %416 = vmatpush.bf16.msra.mxu0 %v954_v2  ;;  %975 = vmatpush.bf16.msra.mxu3 %v954_v2 }
  0x16   : > { %557 = vmatpush.bf16.msra.mxu1 %v962_v16 }
  0x18   : > { %417 = vmatpush.bf16.msra.mxu0 %v953_v3  ;;  %976 = vmatpush.bf16.msra.mxu3 %v953_v3  ;;  %v972_v3 = vld [vmem:[%s1217_s5 + $0x38] sm:$0xff] }
  0x19   : > { %680 = vmatpush.bf16.msra.mxu2 %v972_v3 }
  0x1a   : > { %558 = vmatpush.bf16.msra.mxu1 %v961_v17 }
  0x1c   : > { %418 = vmatpush.bf16.msra.mxu0 %v952_v4  ;;  %977 = vmatpush.bf16.msra.mxu3 %v952_v4 }
  0x1e   : > { %559 = vmatpush.bf16.msra.mxu1 %v960_v20 }
  0x20   : > { %419 = vmatpush.bf16.msra.mxu0 %v951_v5  ;;  %978 = vmatpush.bf16.msra.mxu3 %v951_v5  ;;  %v971_v5 = vld [vmem:[%s1217_s5 + $0x30] sm:$0xff] }
  0x21   : > { %681 = vmatpush.bf16.msra.mxu2 %v971_v5 }
  0x22   : > { %560 = vmatpush.bf16.msra.mxu1 %v959_v21 }
  0x24   : > { %420 = vmatpush.bf16.msra.mxu0 %v950_v6  ;;  %979 = vmatpush.bf16.msra.mxu3 %v950_v6  ;;  %v970_v6 = vld [vmem:[%s1217_s5 + $0x28] sm:$0xff] }
  0x25   : > { %682 = vmatpush.bf16.msra.mxu2 %v970_v6 }
  0x26   : > { %561 = vmatpush.bf16.msra.mxu1 %v958_v22 }
  0x28   : > { %421 = vmatpush.bf16.msra.mxu0 %v949_v7  ;;  %980 = vmatpush.bf16.msra.mxu3 %v949_v7 }
  0x2a   : > { %562 = vmatpush.bf16.msra.mxu1 %v957_v23 }
  0x2b   : > { %422 = vmatmul.bf16.vlgmr.msra.gmra.mxu0 %v941_v8  ;;  %452 = vmatmul.bf16.vlgmr.msra.gmra.mxu3 %v947_v9 }
  0x2c   : > { %981 = vmatpush.bf16.msrb.mxu3 %v964_v14  ;;  %v968_v14 = vld [vmem:[%s1217_s5 + $0x18] sm:$0xff] }
  0x30   : > { %982 = vmatpush.bf16.msrb.mxu3 %v963_v15 }
  0x34   : > { %983 = vmatpush.bf16.msrb.mxu3 %v962_v16 }
  0x38   : > { %984 = vmatpush.bf16.msrb.mxu3 %v961_v17 }
  0x3b   : > { %427 = vmatmul.bf16.gmra.mxu0 %v942_v10  ;;  %457 = vmatmul.bf16.gmra.mxu3 %v948_v11  ;;  %v969_v10 = vld [vmem:[%s1217_s5 + $0x20] sm:$0xff] }
  0x3c   : > { %985 = vmatpush.bf16.msrb.mxu3 %v960_v20  ;;  %683 = vmatpush.bf16.msra.mxu2 %v969_v10 }
  0x40   : > { %986 = vmatpush.bf16.msrb.mxu3 %v959_v21  ;;  %684 = vmatpush.bf16.msra.mxu2 %v968_v14 }
  0x44   : > { %987 = vmatpush.bf16.msrb.mxu3 %v958_v22  ;;  %v967_v22 = vld [vmem:[%s1217_s5 + $0x10] sm:$0xff] }
  0x45   : > { %685 = vmatpush.bf16.msra.mxu2 %v967_v22 }
  0x48   : > { %988 = vmatpush.bf16.msrb.mxu3 %v957_v23  ;;  %v966_v23 = vld [vmem:[%s1217_s5 + $0x8] sm:$0xff] }
  0x49   : > { %686 = vmatpush.bf16.msra.mxu2 %v966_v23 }
  0x4b   : > { %432 = vmatmul.bf16.gmra.mxu0 %v943_v12 }
  0x4c   : > { %989 = vmatpush.bf16.msra.mxu3 %v972_v3 }
  0x50   : > { %990 = vmatpush.bf16.msra.mxu3 %v971_v5 }
  0x54   : > { %991 = vmatpush.bf16.msra.mxu3 %v970_v6 }
  0x58   : > { %992 = vmatpush.bf16.msra.mxu3 %v969_v10 }
  0x5b   : > { %437 = vmatmul.bf16.gmra.mxu0 %v944_v13 }
  0x5c   : > { %993 = vmatpush.bf16.msra.mxu3 %v968_v14 }
  0x60   : > { %994 = vmatpush.bf16.msra.mxu3 %v967_v22 }
  0x64   : > { %995 = vmatpush.bf16.msra.mxu3 %v966_v23 }
  0x6b   : > { %442 = vmatmul.bf16.gmra.mxu0 %v945_v18 }
  0x7b   : > { %447 = vmatmul.bf16.gmra.mxu0 %v946_v19 }
  0xa8   : > { %v423_v24 = vpop.f32.mrf.mxu0 }
  0xa9   : > { %v424_v27 = vadd.f32 %v1122_v25, %v423_v24  ;;  %v965_v24 = vld [vmem:[%s1217_s5] sm:$0xff] }
  0xaa   : > { %687 = vmatpush.bf16.msra.mxu2 %v965_v24  ;;  %996 = vmatpush.bf16.msra.mxu3 %v965_v24 }
  0xab   : > { %v463_v30 = vmax.f32 %v424_v27, 0.0 }
  0xae   : > { %v453_v26 = vpop.f32.mrf.mxu3 }
  0xaf   : > { %v454_v32 = vadd.f32 %v1122_v25, %v453_v26  ;;  %v1006_v26 = vld [vmem:[%s1216_s4] ss:$0 sm:$0xff] }
  0xb0   : > { %v425_v28 = vpop.f32.mrf.mxu0 }
  0xb1   : > { %v426_v29 = vadd.f32 %v1122_v25, %v425_v28  ;;  %v475_v35 = vmax.f32 %v454_v32, 0.0 }
  0xb3   : > { %v464_v31 = vmax.f32 %v426_v29, 0.0 }
  0xb5   : > { %v479_v33 = vpack.c.bf16 %v464_v31, %v463_v30 }
  0xb6   : > { %v455_v34 = vpop.f32.mrf.mxu3 }
  0xb7   : > { %563 = vmatmul.bf16.vlgmr.msra.gmra.mxu1 %v479_v33  ;;  %v456_v36 = vadd.f32 %v1122_v25, %v455_v34 }
  0xb8   : > { %v428_v37 = vpop.f32.mrf.mxu0 }
  0xb9   : > { %v476_v38 = vmax.f32 %v456_v36, 0.0  ;;  %v429_v41 = vadd.f32 %v1122_v25, %v428_v37 }
  0xbb   : > { %v485_v39 = vpack.c.bf16 %v476_v38, %v475_v35  ;;  %v465_v44 = vmax.f32 %v429_v41, 0.0 }
  0xbd   : > { %593 = vmatmul.bf16.vlgmr.msrb.gmra.mxu3 %v485_v39 }
  0xbe   : > { %v458_v40 = vpop.f32.mrf.mxu3 }
  0xbf   : > { %v459_v46 = vadd.f32 %v1122_v25, %v458_v40 }
  0xc0   : > { %v430_v42 = vpop.f32.mrf.mxu0 }
  0xc1   : > { %v431_v43 = vadd.f32 %v1122_v25, %v430_v42  ;;  %v477_v49 = vmax.f32 %v459_v46, 0.0 }
  0xc3   : > { %v466_v45 = vmax.f32 %v431_v43, 0.0 }
  0xc5   : > { %v480_v47 = vpack.c.bf16 %v466_v45, %v465_v44 }
  0xc6   : > { %v460_v48 = vpop.f32.mrf.mxu3 }
  0xc7   : > { %568 = vmatmul.bf16.gmra.mxu1 %v480_v47  ;;  %v461_v50 = vadd.f32 %v1122_v25, %v460_v48 }
  0xc8   : > { %v433_v51 = vpop.f32.mrf.mxu0 }
  0xc9   : > { %v478_v52 = vmax.f32 %v461_v50, 0.0  ;;  %v434_v54 = vadd.f32 %v1122_v25, %v433_v51 }
  0xcb   : > { %v486_v53 = vpack.c.bf16 %v478_v52, %v477_v49  ;;  %v467_v57 = vmax.f32 %v434_v54, 0.0 }
  0xcd   : > { %598 = vmatmul.bf16.gmra.mxu3 %v486_v53 }
  0xd0   : > { %v435_v55 = vpop.f32.mrf.mxu0 }
  0xd1   : > { %v436_v56 = vadd.f32 %v1122_v25, %v435_v55 }
  0xd3   : > { %v468_v58 = vmax.f32 %v436_v56, 0.0 }
  0xd5   : > { %v481_v59 = vpack.c.bf16 %v468_v58, %v467_v57 }
  0xd7   : > { %573 = vmatmul.bf16.gmra.mxu1 %v481_v59 }
  0xd8   : > { %v438_v60 = vpop.f32.mrf.mxu0 }
  0xd9   : > { %v439_v61 = vadd.f32 %v1122_v25, %v438_v60 }
  0xdb   : > { %v469_v0 = vmax.f32 %v439_v61, 0.0 }
  0xe0   : > { %v440_v62 = vpop.f32.mrf.mxu0 }
  0xe1   : > { %v441_v63 = vadd.f32 %v1122_v25, %v440_v62 }
  0xe3   : > { %v470_v1 = vmax.f32 %v441_v63, 0.0 }
  0xe5   : > { %v482_v2 = vpack.c.bf16 %v470_v1, %v469_v0 }
  0xe7   : > { %578 = vmatmul.bf16.gmra.mxu1 %v482_v2  ;;  %v1007_v2 = vld [vmem:[%s1218_s6] ss:$0 sm:$0xff] }
  0xe8   : > { %v443_v4 = vpop.f32.mrf.mxu0 }
  0xe9   : > { %v444_v7 = vadd.f32 %v1122_v25, %v443_v4 }
  0xeb   : > { %v471_v11 = vmax.f32 %v444_v7, 0.0 }
  0xf0   : > { %v445_v8 = vpop.f32.mrf.mxu0 }
  0xf1   : > { %v446_v9 = vadd.f32 %v1122_v25, %v445_v8 }
  0xf3   : > { %v472_v12 = vmax.f32 %v446_v9, 0.0 }
  0xf5   : > { %v483_v13 = vpack.c.bf16 %v472_v12, %v471_v11 }
  0xf7   : > { %583 = vmatmul.bf16.gmra.mxu1 %v483_v13 }
  0xf8   : > { %v448_v15 = vpop.f32.mrf.mxu0 }
  0xf9   : > { %v449_v16 = vadd.f32 %v1122_v25, %v448_v15 }
  0xfb   : > { %v473_v19 = vmax.f32 %v449_v16, 0.0 }
 0x100   : > { %v450_v17 = vpop.f32.mrf.mxu0 }
 0x101   : > { %v451_v18 = vadd.f32 %v1122_v25, %v450_v17 }
 0x103   : > { %v474_v20 = vmax.f32 %v451_v18, 0.0 }
 0x105   : > { %v484_v21 = vpack.c.bf16 %v474_v20, %v473_v19 }
 0x107   : > { %588 = vmatmul.bf16.gmra.mxu1 %v484_v21 }
 0x134   : > { %v564_v25 = vpop.f32.mrf.mxu1 }
 0x135   : > { %v565_v28 = vadd.f32 %v1006_v26, %v564_v25 }
 0x13c   : > { %v566_v27 = vpop.f32.mrf.mxu1 }
 0x13d   : > { %v567_v29 = vadd.f32 %v1006_v26, %v566_v27 }
 0x13f   : > { %v604_v30 = vpack.c.bf16 %v567_v29, %v565_v28 }
 0x140   : > { %v594_v31 = vpop.f32.mrf.mxu3 }
 0x141   : > { %688 = vmatmul.bf16.vlgmr.msra.gmra.mxu2 %v604_v30  ;;  %v595_v33 = vadd.f32 %v1006_v26, %v594_v31 }
 0x144   : > { %v569_v32 = vpop.f32.mrf.mxu1 }
 0x145   : > { %v570_v38 = vadd.f32 %v1006_v26, %v569_v32 }
 0x148   : > { %v596_v34 = vpop.f32.mrf.mxu3 }
 0x149   : > { %v597_v35 = vadd.f32 %v1006_v26, %v596_v34 }
 0x14b   : > { %v610_v36 = vpack.c.bf16 %v597_v35, %v595_v33 }
 0x14c   : > { %v571_v37 = vpop.f32.mrf.mxu1 }
 0x14d   : > { %v572_v39 = vadd.f32 %v1006_v26, %v571_v37  ;;  %718 = vmatmul.bf16.vlgmr.msra.gmra.mxu3 %v610_v36 }
 0x14f   : > { %v605_v40 = vpack.c.bf16 %v572_v39, %v570_v38 }
 0x150   : > { %v599_v41 = vpop.f32.mrf.mxu3 }
 0x151   : > { %693 = vmatmul.bf16.gmra.mxu2 %v605_v40  ;;  %v600_v43 = vadd.f32 %v1006_v26, %v599_v41 }
 0x154   : > { %v574_v42 = vpop.f32.mrf.mxu1 }
 0x155   : > { %v575_v48 = vadd.f32 %v1006_v26, %v574_v42 }
 0x158   : > { %v601_v44 = vpop.f32.mrf.mxu3 }
 0x159   : > { %v602_v45 = vadd.f32 %v1006_v26, %v601_v44 }
 0x15b   : > { %v611_v46 = vpack.c.bf16 %v602_v45, %v600_v43 }
 0x15c   : > { %v576_v47 = vpop.f32.mrf.mxu1 }
 0x15d   : > { %v577_v49 = vadd.f32 %v1006_v26, %v576_v47  ;;  %723 = vmatmul.bf16.gmra.mxu3 %v611_v46 }
 0x15f   : > { %v606_v50 = vpack.c.bf16 %v577_v49, %v575_v48 }
 0x161   : > { %698 = vmatmul.bf16.gmra.mxu2 %v606_v50 }
 0x164   : > { %v579_v51 = vpop.f32.mrf.mxu1 }
 0x165   : > { %v580_v53 = vadd.f32 %v1006_v26, %v579_v51 }
 0x16c   : > { %v581_v52 = vpop.f32.mrf.mxu1 }
 0x16d   : > { %v582_v54 = vadd.f32 %v1006_v26, %v581_v52 }
 0x16f   : > { %v607_v55 = vpack.c.bf16 %v582_v54, %v580_v53 }
 0x171   : > { %703 = vmatmul.bf16.gmra.mxu2 %v607_v55 }
 0x174   : > { %v584_v56 = vpop.f32.mrf.mxu1 }
 0x175   : > { %v585_v58 = vadd.f32 %v1006_v26, %v584_v56 }
 0x17c   : > { %v586_v57 = vpop.f32.mrf.mxu1 }
 0x17d   : > { %v587_v59 = vadd.f32 %v1006_v26, %v586_v57 }
 0x17f   : > { %v608_v60 = vpack.c.bf16 %v587_v59, %v585_v58 }
 0x181   : > { %708 = vmatmul.bf16.gmra.mxu2 %v608_v60 }
 0x184   : > { %v589_v61 = vpop.f32.mrf.mxu1 }
 0x185   : > { %v590_v63 = vadd.f32 %v1006_v26, %v589_v61 }
 0x18c   : > { %v591_v62 = vpop.f32.mrf.mxu1 }
 0x18d   : > { %v592_v0 = vadd.f32 %v1006_v26, %v591_v62 }
 0x18f   : > { %v609_v1 = vpack.c.bf16 %v592_v0, %v590_v63 }
 0x191   : > { %713 = vmatmul.bf16.gmra.mxu2 %v609_v1 }
 0x1c4   : > { %v689_v3 = vpop.f32.mrf.mxu2 }
 0x1c5   : > { %v690_v4 = vadd.f32 %v1007_v2, %v689_v3 }
 0x1c7   : > { %730 = vst.msk [vmem:[%s1175_s25] sm:$0xff] %vm729_vm0, %v690_v4 }
 0x1cc   : > { %v691_v5 = vpop.f32.mrf.mxu2 }
 0x1cd   : > { %v692_v6 = vadd.f32 %v1007_v2, %v691_v5 }
 0x1cf   : > { %731 = vst.msk [vmem:[%s1175_s25 + $0x8] sm:$0xff] %vm729_vm0, %v692_v6 }
 0x1d0   : > { %v719_v7 = vpop.f32.mrf.mxu3 }
 0x1d1   : > { %v720_v8 = vadd.f32 %v1007_v2, %v719_v7 }
 0x1d3   : > { %742 = vst.msk [vmem:[%s1175_s25 + $0x60] sm:$0xff] %vm729_vm0, %v720_v8 }
 0x1d4   : > { %v694_v9 = vpop.f32.mrf.mxu2 }
 0x1d5   : > { %v695_v10 = vadd.f32 %v1007_v2, %v694_v9 }
 0x1d7   : > { %732 = vst.msk [vmem:[%s1175_s25 + $0x10] sm:$0xff] %vm729_vm0, %v695_v10 }
 0x1d8   : > { %v721_v11 = vpop.f32.mrf.mxu3 }
 0x1d9   : > { %v722_v12 = vadd.f32 %v1007_v2, %v721_v11 }
 0x1db   : > { %743 = vst.msk [vmem:[%s1175_s25 + $0x68] sm:$0xff] %vm729_vm0, %v722_v12 }
 0x1dc   : > { %v696_v13 = vpop.f32.mrf.mxu2 }
 0x1dd   : > { %v697_v14 = vadd.f32 %v1007_v2, %v696_v13 }
 0x1df   : > { %733 = vst.msk [vmem:[%s1175_s25 + $0x18] sm:$0xff] %vm729_vm0, %v697_v14 }
 0x1e0   : > { %v724_v15 = vpop.f32.mrf.mxu3 }
 0x1e1   : > { %v725_v16 = vadd.f32 %v1007_v2, %v724_v15 }
 0x1e3   : > { %744 = vst.msk [vmem:[%s1175_s25 + $0x70] sm:$0xff] %vm729_vm0, %v725_v16 }
 0x1e4   : > { %v699_v17 = vpop.f32.mrf.mxu2 }
 0x1e5   : > { %v700_v18 = vadd.f32 %v1007_v2, %v699_v17 }
 0x1e7   : > { %734 = vst.msk [vmem:[%s1175_s25 + $0x20] sm:$0xff] %vm729_vm0, %v700_v18 }
 0x1e8   : > { %v726_v19 = vpop.f32.mrf.mxu3 }
 0x1e9   : > { %v727_v20 = vadd.f32 %v1007_v2, %v726_v19 }
 0x1eb   : > { %745 = vst.msk [vmem:[%s1175_s25 + $0x78] sm:$0xff] %vm729_vm0, %v727_v20 }
 0x1ec   : > { %v701_v21 = vpop.f32.mrf.mxu2 }
 0x1ed   : > { %v702_v22 = vadd.f32 %v1007_v2, %v701_v21 }
 0x1ef   : > { %735 = vst.msk [vmem:[%s1175_s25 + $0x28] sm:$0xff] %vm729_vm0, %v702_v22 }
 0x1f4   : > { %v704_v23 = vpop.f32.mrf.mxu2 }
 0x1f5   : > { %v705_v24 = vadd.f32 %v1007_v2, %v704_v23 }
 0x1f7   : > { %736 = vst.msk [vmem:[%s1175_s25 + $0x30] sm:$0xff] %vm729_vm0, %v705_v24 }
 0x1fc   : > { %v706_v25 = vpop.f32.mrf.mxu2 }
 0x1fd   : > { %v707_v26 = vadd.f32 %v1007_v2, %v706_v25 }
 0x1ff   : > { %737 = vst.msk [vmem:[%s1175_s25 + $0x38] sm:$0xff] %vm729_vm0, %v707_v26 }
 0x204   : > { %v709_v27 = vpop.f32.mrf.mxu2 }
 0x205   : > { %v710_v28 = vadd.f32 %v1007_v2, %v709_v27 }
 0x207   : > { %738 = vst.msk [vmem:[%s1175_s25 + $0x40] sm:$0xff] %vm729_vm0, %v710_v28 }
 0x20c   : > { %v711_v29 = vpop.f32.mrf.mxu2 }
 0x20d   : > { %v712_v30 = vadd.f32 %v1007_v2, %v711_v29 }
 0x20f   : > { %739 = vst.msk [vmem:[%s1175_s25 + $0x48] sm:$0xff] %vm729_vm0, %v712_v30 }
 0x214   : > { %v714_v31 = vpop.f32.mrf.mxu2 }
 0x215   : > { %v715_v32 = vadd.f32 %v1007_v2, %v714_v31 }
 0x217   : > { %740 = vst.msk [vmem:[%s1175_s25 + $0x50] sm:$0xff] %vm729_vm0, %v715_v32 }
 0x21c   : > { %v716_v33 = vpop.f32.mrf.mxu2 }
 0x21d   : > { %v717_v34 = vadd.f32 %v1007_v2, %v716_v33 }
 0x21f   : > { %741 = vst.msk [vmem:[%s1175_s25 + $0x58] sm:$0xff] %vm729_vm0, %v717_v34 }
 0x220 PF: > { %s17_s24 = sadd.s32 1, %s1014_s24  }
 0x221   : > { %p14_p5 = scmp.ge.s32.totalorder %s17_s24, 5  }
 0x223   :  { %16 = sbr.rel (!%p14_p5) target bundleno = 1 (0x1), region = 78 }

</bundles_post_ra>
